<compile_context>
chip_gen: v7x
topology: tpu7x:2x2x1
jax: 0.10.0
libtpu: 0.0.40
codegen_flags: <defaults>
</compile_context>

<pallas_src>
import math
import jax
import jax.numpy as jnp
from jax.experimental import pallas as pl
from jax.experimental.pallas import tpu as pltpu

# Model dims (input_size must equal 768 for the PyTorch forward to typecheck)
D = 768            # embed_dim == input_size
H = 12             # num_heads
HD = D // H        # head_dim = 64
HIDDEN = 500       # fc1 out (folded away host-side)
OUT = 10           # output_size
S = 8              # sequence length
B = 2              # batch
SCALE = 1.0 / math.sqrt(HD)   # 0.125, exact in bf16
NQKV = 3           # grid steps: one per Q / K / V column block of the fused projection


def transformer_cls_kernel(x_ref, wqkv_ref, bqkv_ref, e_dh_ref, e_hd_ref,
                           wcls_ref, bcls_ref, out_ref, qk_scr):
    f32 = jnp.float32
    bf16 = jnp.bfloat16
    j = pl.program_id(0)

    # Step j: one (B*S, D) column chunk of the fused QKV projection.
    # bf16 weight streaming, f32 accumulation.
    chunk = jnp.dot(x_ref[...].astype(bf16), wqkv_ref[...],
                    preferred_element_type=f32) + bqkv_ref[...]      # (B*S, D)

    # Park Q (step 0) and K (step 1) in persistent VMEM scratch; the V chunk
    # (step 2) is consumed directly below.
    @pl.when(j == 0)
    def _():
        qk_scr[0] = chunk

    @pl.when(j == 1)
    def _():
        qk_scr[1] = chunk

    @pl.when(j == NQKV - 1)
    def _tail():
        q = qk_scr[0]                                                # (B*S, D)
        k = qk_scr[1]
        v = chunk

        # Only query position 0 of each batch row reaches the classifier head.
        q0 = q.reshape(B, S, D)[:, 0:1, :]                           # (B, 1, D)
        k3 = k.reshape(B, S, D)                                      # (B, S, D)
        v3 = v.reshape(B, S, D)

        # Per-head scores without tiny per-head MXU matmuls:
        #   scores[b, s, h] = SCALE * sum_{d in head h} q0[b, d] * k[b, s, d]
        # (SCALE is folded into e_dh host-side.)
        prod = (q0 * k3).reshape(B * S, D)                           # VPU elementwise
        scores = jnp.dot(prod.astype(bf16), e_dh_ref[...],
                         preferred_element_type=f32).reshape(B, S, H)

        # Numerically-stable softmax over the key axis; reciprocal on the EUP.
        m = jnp.max(scores, axis=1, keepdims=True)
        p = jnp.exp(scores - m)                                      # (B, S, H)
        inv_l = pl.reciprocal(jnp.sum(p, axis=1, keepdims=True), approx=True)
        p = p * inv_l

        # Expand per-head probs back to lane width D, reduce over keys.
        p_exp = jnp.dot(p.reshape(B * S, H).astype(bf16), e_hd_ref[...],
                        preferred_element_type=f32).reshape(B, S, D)
        context = jnp.sum(p_exp * v3, axis=1)                        # (B, D) f32

        # Folded classifier head: out = context @ (Wo @ W1 @ W2) + b_cls   (f32)
        out = jnp.dot(context, wcls_ref[...],
                      preferred_element_type=f32) + bcls_ref[...]    # (B, OUT)
        out_ref[...] = out


def transformer_classifier(x, kp):
    """x: (B, S, D) f32; kp: dict from prep_kernel_params."""
    B_, S_, D_ = x.shape
    assert (B_, S_, D_) == (B, S, D)
    x_flat = x.reshape(B_ * S_, D_)

    def const_spec(shape):
        n = len(shape)
        return pl.BlockSpec(shape, lambda j, n=n: (0,) * n)

    in_specs = [
        const_spec((B * S, D)),                         # x (constant across steps)
        pl.BlockSpec((D, D), lambda j: (0, j)),         # wqkv column block (streamed)
        pl.BlockSpec((1, D), lambda j: (0, j)),         # bqkv column block
        const_spec((D, H)),                             # e_dh (scale folded in)
        const_spec((H, D)),                             # e_hd
        const_spec((D, OUT)),                           # W_cls = Wo @ W1 @ W2 (f32)
        const_spec((1, OUT)),                           # b_cls
    ]

    out = pl.pallas_call(
        transformer_cls_kernel,
        out_shape=jax.ShapeDtypeStruct((B_, OUT), jnp.float32),
        grid=(NQKV,),
        in_specs=in_specs,
        out_specs=pl.BlockSpec((B_, OUT), lambda j: (0, 0)),
        scratch_shapes=[pltpu.VMEM((2, B * S, D), jnp.float32)],
        compiler_params=pltpu.CompilerParams(
            dimension_semantics=("arbitrary",)),
    )(x_flat, kp["wqkv"], kp["bqkv"], kp["e_dh"], kp["e_hd"],
      kp["w_cls"], kp["b_cls"])
    return out


def prep_kernel_params(p):
    """Host-side packing: fuse QKV (bf16), fold Wo/fc1/fc2 into one f32 matrix."""
    bf16, f32 = jnp.bfloat16, jnp.float32
    hp = jax.lax.Precision.HIGHEST

    # Head-selector matrices (0/1); fold the 1/sqrt(HD) score scale into e_dh
    # (0.125 is exact in bf16, so this is lossless).
    sel = (jnp.arange(D)[:, None] // HD == jnp.arange(H)[None, :]).astype(f32)
    e_dh = (sel * SCALE).astype(bf16)                                # (D, H)
    e_hd = sel.T.astype(bf16)                                        # (H, D)

    # Fold the affine chain after attention (no nonlinearity in the module):
    #   out = ((ctx @ Wo + bo) @ W1 + b1) @ W2 + b2
    #       =  ctx @ (Wo @ W1 @ W2) + ((bo @ W1 + b1) @ W2 + b2)
    w_cls = jnp.dot(jnp.dot(p["wo_t"], p["w1_t"], precision=hp),
                    p["w2_t"], precision=hp)                         # (D, OUT) f32
    b_cls = jnp.dot(jnp.dot(p["bo"], p["w1_t"], precision=hp) + p["b1"],
                    p["w2_t"], precision=hp) + p["b2"]               # (1, OUT) f32

    return {
        "wqkv": jnp.concatenate([p["wq_t"], p["wk_t"], p["wv_t"]],
                                axis=1).astype(bf16),                # (D, 3D)
        "bqkv": jnp.concatenate([p["bq"], p["bk"], p["bv"]], axis=1),  # (1, 3D) f32
        "e_dh": e_dh, "e_hd": e_hd,
        "w_cls": w_cls.astype(f32), "b_cls": b_cls.astype(f32),
    }


def reference_forward(x, p):
    """Pure-JAX f32 reference replicating the PyTorch forward exactly."""
    B_, S_, _ = x.shape
    hp = jax.lax.Precision.HIGHEST
    q = jnp.dot(x, p["wq_t"], precision=hp) + p["bq"]
    k = jnp.dot(x, p["wk_t"], precision=hp) + p["bk"]
    v = jnp.dot(x, p["wv_t"], precision=hp) + p["bv"]
    qh = q.reshape(B_, S_, H, HD).transpose(0, 2, 1, 3)
    kh = k.reshape(B_, S_, H, HD).transpose(0, 2, 1, 3)
    vh = v.reshape(B_, S_, H, HD).transpose(0, 2, 1, 3)
    s = jnp.einsum("bhqd,bhkd->bhqk", qh, kh, precision=hp) * SCALE
    a = jax.nn.softmax(s, axis=-1)
    o = jnp.einsum("bhqk,bhkd->bhqd", a, vh, precision=hp)
    o = o.transpose(0, 2, 1, 3).reshape(B_, S_, D)
    attn = jnp.dot(o, p["wo_t"], precision=hp) + p["bo"]
    cls = attn[:, 0, :]          # == attn_output[0, :, :] in the module's (S,B,D) layout
    h1 = jnp.dot(cls, p["w1_t"], precision=hp) + p["b1"]
    return jnp.dot(h1, p["w2_t"], precision=hp) + p["b2"]


def init_params(key):
    ks = jax.random.split(key, 12)
    f = lambda k, shp, sc=0.02: jax.random.normal(k, shp, jnp.float32) * sc
    return {
        "wq_t": f(ks[0], (D, D)),         "wk_t": f(ks[1], (D, D)),
        "wv_t": f(ks[2], (D, D)),         "wo_t": f(ks[3], (D, D)),
        "bq": f(ks[4], (1, D)),           "bk": f(ks[5], (1, D)),
        "bv": f(ks[6], (1, D)),           "bo": f(ks[7], (1, D)),
        "w1_t": f(ks[8], (D, HIDDEN)),    "b1": f(ks[9], (1, HIDDEN)),
        "w2_t": f(ks[10], (HIDDEN, OUT)), "b2": f(ks[11], (1, OUT)),
    }


if __name__ == "__main__":
    key = jax.random.PRNGKey(0)
    kx, kpk = jax.random.split(key)
    x = jax.random.normal(kx, (B, S, D), jnp.float32)
    params = init_params(kpk)
    kparams = prep_kernel_params(params)

    y = transformer_classifier(x, kparams)
    y = jax.block_until_ready(y)

    y_ref = reference_forward(x, params)
    assert y.shape == (B, OUT)
    assert jnp.allclose(y, y_ref, rtol=1e-2, atol=5e-3), "mismatch vs reference"

    print("KERNEL_OK")
</pallas_src>

<mosaic_0001>
module attributes {stable_mosaic.version = 11 : i64} {
  func.func @transformer_cls_kernel(%arg0: i32, %arg1: memref<16x768xf32, #tpu.memory_space<vmem>>, %arg2: memref<768x768xbf16, #tpu.memory_space<vmem>>, %arg3: memref<1x768xf32, #tpu.memory_space<vmem>>, %arg4: memref<768x12xbf16, #tpu.memory_space<vmem>>, %arg5: memref<12x768xbf16, #tpu.memory_space<vmem>>, %arg6: memref<768x10xf32, #tpu.memory_space<vmem>>, %arg7: memref<1x10xf32, #tpu.memory_space<vmem>>, %arg8: memref<2x10xf32, #tpu.memory_space<vmem>>, %arg9: memref<2x16x768xf32, #tpu.memory_space<vmem>>) attributes {dimension_semantics = [#tpu.dimension_semantics<arbitrary>], iteration_bounds = array<i64: 3>, scalar_prefetch = 0 : i64, scratch_operands = 1 : i64, tpu.core_type = #tpu.core_type<tc>, window_params = [{pipeline_mode = #tpu.pipeline_mode<synchronous>, transform_indices = @transform_0, window_bounds = array<i64: 16, 768>}, {transform_indices = @transform_1, window_bounds = array<i64: 768, 768>}, {transform_indices = @transform_2, window_bounds = array<i64: 1, 768>}, {pipeline_mode = #tpu.pipeline_mode<synchronous>, transform_indices = @transform_3, window_bounds = array<i64: 768, 12>}, {pipeline_mode = #tpu.pipeline_mode<synchronous>, transform_indices = @transform_4, window_bounds = array<i64: 12, 768>}, {pipeline_mode = #tpu.pipeline_mode<synchronous>, transform_indices = @transform_5, window_bounds = array<i64: 768, 10>}, {pipeline_mode = #tpu.pipeline_mode<synchronous>, transform_indices = @transform_6, window_bounds = array<i64: 1, 10>}, {pipeline_mode = #tpu.pipeline_mode<synchronous>, transform_indices = @transform_7, window_bounds = array<i64: 2, 10>}]} {
    %c0 = arith.constant 0 : index
    %c0_0 = arith.constant 0 : index
    %0 = vector.load %arg1[%c0, %c0_0] : memref<16x768xf32, #tpu.memory_space<vmem>>, vector<16x768xf32>
    %1 = arith.truncf %0 : vector<16x768xf32> to vector<16x768xbf16>
    %c0_1 = arith.constant 0 : index
    %c0_2 = arith.constant 0 : index
    %2 = vector.load %arg2[%c0_1, %c0_2] : memref<768x768xbf16, #tpu.memory_space<vmem>>, vector<768x768xbf16>
    %cst = arith.constant dense<0.000000e+00> : vector<16x768xf32>
    %3 = tpu.matmul %1, %2, %cst {dimension_numbers = #tpu.dot_dimension_numbers<[1], [0], [0], [1], [0, 0, 1, 1], [], []>} : vector<16x768xbf16>, vector<768x768xbf16>, vector<16x768xf32> -> vector<16x768xf32>
    %c0_3 = arith.constant 0 : index
    %c0_4 = arith.constant 0 : index
    %4 = vector.load %arg3[%c0_3, %c0_4] : memref<1x768xf32, #tpu.memory_space<vmem>>, vector<1x768xf32>
    %5 = vector.broadcast %4 : vector<1x768xf32> to vector<16x768xf32>
    %6 = arith.addf %3, %5 : vector<16x768xf32>
    %c0_i32 = arith.constant 0 : i32
    %7 = arith.cmpi eq, %arg0, %c0_i32 : i32
    %8 = arith.extui %7 : i1 to i32
    %c0_i32_5 = arith.constant 0 : i32
    %9 = arith.cmpi ne, %8, %c0_i32_5 : i32
    scf.if %9 {
      %c0_8 = arith.constant 0 : index
      %c0_9 = arith.constant 0 : index
      %c0_10 = arith.constant 0 : index
      %16 = vector.load %arg9[%c0_8, %c0_9, %c0_10] : memref<2x16x768xf32, #tpu.memory_space<vmem>>, vector<1x16x768xf32>
      %17 = vector.shape_cast %16 : vector<1x16x768xf32> to vector<16x768xf32>
      %18 = vector.shape_cast %6 : vector<16x768xf32> to vector<1x16x768xf32>
      tpu.vector_store %arg9[%c0_8, %c0_9, %c0_10], %18 {strides = array<i32>} : memref<2x16x768xf32, #tpu.memory_space<vmem>>, vector<1x16x768xf32>,
    } else {
    }
    %c1_i32 = arith.constant 1 : i32
    %10 = arith.cmpi eq, %arg0, %c1_i32 : i32
    %11 = arith.extui %10 : i1 to i32
    %c0_i32_6 = arith.constant 0 : i32
    %12 = arith.cmpi ne, %11, %c0_i32_6 : i32
    scf.if %12 {
      %c1 = arith.constant 1 : index
      %c0_8 = arith.constant 0 : index
      %c0_9 = arith.constant 0 : index
      %16 = vector.load %arg9[%c1, %c0_8, %c0_9] : memref<2x16x768xf32, #tpu.memory_space<vmem>>, vector<1x16x768xf32>
      %17 = vector.shape_cast %16 : vector<1x16x768xf32> to vector<16x768xf32>
      %18 = vector.shape_cast %6 : vector<16x768xf32> to vector<1x16x768xf32>
      tpu.vector_store %arg9[%c1, %c0_8, %c0_9], %18 {strides = array<i32>} : memref<2x16x768xf32, #tpu.memory_space<vmem>>, vector<1x16x768xf32>,
    } else {
    }
    %c2_i32 = arith.constant 2 : i32
    %13 = arith.cmpi eq, %arg0, %c2_i32 : i32
    %14 = arith.extui %13 : i1 to i32
    %c0_i32_7 = arith.constant 0 : i32
    %15 = arith.cmpi ne, %14, %c0_i32_7 : i32
    scf.if %15 {
      %c0_8 = arith.constant 0 : index
      %c0_9 = arith.constant 0 : index
      %c0_10 = arith.constant 0 : index
      %16 = vector.load %arg9[%c0_8, %c0_9, %c0_10] : memref<2x16x768xf32, #tpu.memory_space<vmem>>, vector<1x16x768xf32>
      %17 = vector.shape_cast %16 : vector<1x16x768xf32> to vector<16x768xf32>
      %c1 = arith.constant 1 : index
      %c0_11 = arith.constant 0 : index
      %c0_12 = arith.constant 0 : index
      %18 = vector.load %arg9[%c1, %c0_11, %c0_12] : memref<2x16x768xf32, #tpu.memory_space<vmem>>, vector<1x16x768xf32>
      %19 = vector.shape_cast %18 : vector<1x16x768xf32> to vector<16x768xf32>
      %20 = vector.shape_cast %17 : vector<16x768xf32> to vector<2x8x768xf32>
      %21 = vector.extract_strided_slice %20 {offsets = [0, 0, 0], sizes = [2, 1, 768], strides = [1, 1, 1]} : vector<2x8x768xf32> to vector<2x1x768xf32>
      %22 = vector.shape_cast %19 : vector<16x768xf32> to vector<2x8x768xf32>
      %23 = vector.shape_cast %6 : vector<16x768xf32> to vector<2x8x768xf32>
      %24 = vector.broadcast %21 : vector<2x1x768xf32> to vector<2x8x768xf32>
      %25 = arith.mulf %24, %22 : vector<2x8x768xf32>
      %26 = vector.shape_cast %25 : vector<2x8x768xf32> to vector<16x768xf32>
      %27 = arith.truncf %26 : vector<16x768xf32> to vector<16x768xbf16>
      %c0_13 = arith.constant 0 : index
      %c0_14 = arith.constant 0 : index
      %28 = vector.load %arg4[%c0_13, %c0_14] : memref<768x12xbf16, #tpu.memory_space<vmem>>, vector<768x12xbf16>
      %cst_15 = arith.constant dense<0.000000e+00> : vector<16x12xf32>
      %29 = tpu.matmul %27, %28, %cst_15 {dimension_numbers = #tpu.dot_dimension_numbers<[1], [0], [0], [1], [0, 0, 1, 1], [], []>} : vector<16x768xbf16>, vector<768x12xbf16>, vector<16x12xf32> -> vector<16x12xf32>
      %30 = vector.shape_cast %29 : vector<16x12xf32> to vector<2x8x12xf32>
      %cst_16 = arith.constant dense<0xFF800000> : vector<2x12xf32>
      %31 = vector.multi_reduction <maximumf>, %30, %cst_16 [1] : vector<2x8x12xf32> to vector<2x12xf32>
      %32 = vector.shape_cast %31 : vector<2x12xf32> to vector<2x1x12xf32>
      %33 = vector.broadcast %32 : vector<2x1x12xf32> to vector<2x8x12xf32>
      %34 = arith.subf %30, %33 : vector<2x8x12xf32>
      %35 = math.exp %34 : vector<2x8x12xf32>
      %cst_17 = arith.constant dense<0.000000e+00> : vector<2x12xf32>
      %36 = vector.multi_reduction <add>, %35, %cst_17 [1] : vector<2x8x12xf32> to vector<2x12xf32>
      %37 = vector.shape_cast %36 : vector<2x12xf32> to vector<2x1x12xf32>
      %38 = tpu.reciprocal %37 {approx = true} : vector<2x1x12xf32> -> vector<2x1x12xf32>
      %39 = vector.broadcast %38 : vector<2x1x12xf32> to vector<2x8x12xf32>
      %40 = arith.mulf %35, %39 : vector<2x8x12xf32>
      %41 = vector.shape_cast %40 : vector<2x8x12xf32> to vector<16x12xf32>
      %42 = arith.truncf %41 : vector<16x12xf32> to vector<16x12xbf16>
      %c0_18 = arith.constant 0 : index
      %c0_19 = arith.constant 0 : index
      %43 = vector.load %arg5[%c0_18, %c0_19] : memref<12x768xbf16, #tpu.memory_space<vmem>>, vector<12x768xbf16>
      %cst_20 = arith.constant dense<0.000000e+00> : vector<16x768xf32>
      %44 = tpu.matmul %42, %43, %cst_20 {dimension_numbers = #tpu.dot_dimension_numbers<[1], [0], [0], [1], [0, 0, 1, 1], [], []>} : vector<16x12xbf16>, vector<12x768xbf16>, vector<16x768xf32> -> vector<16x768xf32>
      %45 = vector.shape_cast %44 : vector<16x768xf32> to vector<2x8x768xf32>
      %46 = arith.mulf %45, %23 : vector<2x8x768xf32>
      %cst_21 = arith.constant dense<0.000000e+00> : vector<2x768xf32>
      %47 = vector.multi_reduction <add>, %46, %cst_21 [1] : vector<2x8x768xf32> to vector<2x768xf32>
      %c0_22 = arith.constant 0 : index
      %c0_23 = arith.constant 0 : index
      %48 = vector.load %arg6[%c0_22, %c0_23] : memref<768x10xf32, #tpu.memory_space<vmem>>, vector<768x10xf32>
      %cst_24 = arith.constant dense<0.000000e+00> : vector<2x10xf32>
      %49 = tpu.matmul %47, %48, %cst_24 {dimension_numbers = #tpu.dot_dimension_numbers<[1], [0], [0], [1], [0, 0, 1, 1], [], []>} : vector<2x768xf32>, vector<768x10xf32>, vector<2x10xf32> -> vector<2x10xf32>
      %c0_25 = arith.constant 0 : index
      %c0_26 = arith.constant 0 : index
      %50 = vector.load %arg7[%c0_25, %c0_26] : memref<1x10xf32, #tpu.memory_space<vmem>>, vector<1x10xf32>
      %51 = vector.broadcast %50 : vector<1x10xf32> to vector<2x10xf32>
      %52 = arith.addf %49, %51 : vector<2x10xf32>
      %c0_27 = arith.constant 0 : index
      %c0_28 = arith.constant 0 : index
      %53 = vector.load %arg8[%c0_27, %c0_28] : memref<2x10xf32, #tpu.memory_space<vmem>>, vector<2x10xf32>
      tpu.vector_store %arg8[%c0_27, %c0_28], %52 {strides = array<i32>} : memref<2x10xf32, #tpu.memory_space<vmem>>, vector<2x10xf32>,
    } else {
    }
    return
  }
  func.func @transform_0(%arg0: i32) -> (i32, i32) {
    %c0_i32 = arith.constant 0 : i32
    %c0_i32_0 = arith.constant 0 : i32
    %c0_i32_1 = arith.constant 0 : i32
    return %c0_i32, %c0_i32_0 : i32, i32
  }
  func.func @transform_1(%arg0: i32) -> (i32, i32) {
    %c0_i32 = arith.constant 0 : i32
    %c0_i32_0 = arith.constant 0 : i32
    return %c0_i32, %arg0 : i32, i32
  }
  func.func @transform_2(%arg0: i32) -> (i32, i32) {
    %c0_i32 = arith.constant 0 : i32
    %c0_i32_0 = arith.constant 0 : i32
    return %c0_i32, %arg0 : i32, i32
  }
  func.func @transform_3(%arg0: i32) -> (i32, i32) {
    %c0_i32 = arith.constant 0 : i32
    %c0_i32_0 = arith.constant 0 : i32
    %c0_i32_1 = arith.constant 0 : i32
    return %c0_i32, %c0_i32_0 : i32, i32
  }
  func.func @transform_4(%arg0: i32) -> (i32, i32) {
    %c0_i32 = arith.constant 0 : i32
    %c0_i32_0 = arith.constant 0 : i32
    %c0_i32_1 = arith.constant 0 : i32
    return %c0_i32, %c0_i32_0 : i32, i32
  }
  func.func @transform_5(%arg0: i32) -> (i32, i32) {
    %c0_i32 = arith.constant 0 : i32
    %c0_i32_0 = arith.constant 0 : i32
    %c0_i32_1 = arith.constant 0 : i32
    return %c0_i32, %c0_i32_0 : i32, i32
  }
  func.func @transform_6(%arg0: i32) -> (i32, i32) {
    %c0_i32 = arith.constant 0 : i32
    %c0_i32_0 = arith.constant 0 : i32
    %c0_i32_1 = arith.constant 0 : i32
    return %c0_i32, %c0_i32_0 : i32, i32
  }
  func.func @transform_7(%arg0: i32) -> (i32, i32) {
    %c0_i32 = arith.constant 0 : i32
    %c0_i32_0 = arith.constant 0 : i32
    %c0_i32_1 = arith.constant 0 : i32
    return %c0_i32, %c0_i32_0 : i32, i32
  }
}

</mosaic_0001>

<bundles_post_ra>
// kernel: tpu_custom_call.1
= control target key start
LH: loop header
LB: loop body
LE: loop exit
PB: predicated region body
PF: predicated region fallthrough
CT: control target
= control target key end

     0   :  { %s6587_s0 = inlined_call_operand.hbm [shape: f32[16,768], index: 0, kind: input, shape index: {}]   ;;  %s6588_s1 = inlined_call_operand.hbm [shape: bf16[768,2304], index: 1, kind: input, shape index: {}]   ;;  %s6589_s2 = inlined_call_operand.hbm [shape: f32[1,2304], index: 2, kind: input, shape index: {}]   ;;  %s6590_s3 = inlined_call_operand.vmem [shape: bf16[768,12], index: 3, kind: input, shape index: {}]   ;;  %s6591_s4 = inlined_call_operand.hbm [shape: bf16[12,768], index: 4, kind: input, shape index: {}]   ;;  %s6592_s5 = inlined_call_operand.vmem [shape: f32[768,10], index: 5, kind: input, shape index: {}]   ;;  %s6593_s6 = inlined_call_operand.hbm [shape: f32[1,10], index: 6, kind: input, shape index: {}]   ;;  %s6594_s7 = inlined_call_operand.hbm [shape: f32[2,10], index: 7, kind: output, shape index: {}]  }
   0x1   :  { %6606 = sst [smem:[#allocation19_spill]] %s6588_s1 }
   0x2   :  { %6607 = sst [smem:[#allocation20_spill]] %s6591_s4 }
   0x3   :  { %6608 = sst [smem:[#allocation21_spill]] %s6594_s7 }
   0x4   :  { %12 = vsyncpa [#allocation4], 0 }
   0x5   :  { %13 = vsyncpa [#allocation7], 0 }
   0x6   :  { %15 = vsyncpa [#allocation7 + $0x1], 0 }
   0x7   :  { %16 = vsyncpa [#allocation10], 0 }
   0x8   :  { %17 = vsyncpa [#allocation5], 0  ;;  %s5450_s24 = smov 0   ;;  %s5452_s25 = smov 0  }
   0x9   :  { %s5454_s26 = smov 0   ;;  %s5456_s27 = smov 0  }
   0xa LB: > { %s5469_s28 = sadd.s32 4294967295, %s5396_s27   ;;  %s5472_s29 = sadd.s32 1, %s5396_s27   ;;  %s5396_s27 = sphi %s5456_s27, %s6634_s27   ;;  %s5392_s26 = sphi %s5454_s26, %s6638_s26   ;;  %s5388_s25 = sphi %s5452_s25, %s6637_s25   ;;  %s5384_s24 = sphi %s5450_s24, %s6636_s24  }
   0xb   : > { %6609 = sst [smem:[#allocation17_spill]] %s5472_s29  ;;  %s48_s30 = ssub.s32 %s5396_s27, %s5472_s29 }
   0xc   : > { %s51_s8 = sadd.s32 1, %s5392_s26  ;;  %p49_p0 = scmp.eq.s32.totalorder %s48_s30, 0 }
   0xd   : > { %p58_p1 = scmp.ne.s32.totalorder %s5392_s26, %s5388_s25  ;;  %p59_p2 = scmp.eq.s32.totalorder %s5396_s27, 0 }
   0xe   : > { %p64_p3 = scmp.ne.s32.totalorder %s5388_s25, %s5384_s24  ;;  %p6595_p5 = scmp.eq.s32.totalorder %s5469_s28, 0 }
   0xf   : > { %s5482_s9 = scalar_select %p49_p0, %s5392_s26, %s51_s8  }
  0x10   : > { %p5484_p4 = por %p59_p2, %p58_p1  ;;  %p3919_p6 = scmp.ge.s32.totalorder %s5396_s27, 1 }
  0x11   : > { %6610 = sst [smem:[#allocation18_spill]] %s5482_s9  ;;  %p206_p7 = scmp.lt.s32.totalorder %s5396_s27, 4 }
  0x12   : > { %p5493_p8 = por %p6595_p5, %p64_p3  ;;  %s5398_s13 = smov [#allocation9]  }
  0x13   : > { %p5498_p10 = pnand %p3919_p6, %p206_p7  ;;  %s234_s14 = sshll.u32 %s5398_s13, 4  ;;  %s235_s14 = int_to_ptr.vmem [resolvable:$true] %s234_s14 }
  0x14   : > { %s6612_s11 = scalar_select %p5493_p8, 1, 0 }
  0x15   : > { %s6613_s12 = scalar_select %p5498_p10, 1, 0 }
  0x16   : > { %p4615_p11 = pneg %p5498_p10  ;;  %p4635_p13 = scmp.lt.s32.totalorder %s5396_s27, 3 }
  0x17   : > { %s264_s17 = sand.u32 1, %s5392_s26   ;;  %s6616_s4 = sld [smem:[#allocation20_spill]] }
  0x18   : > { %p5506_p12 = pnand %p4615_p11, %p6595_p5  ;;  %p5515_p0 = pnand %p4635_p13, %p5484_p4 }
  0x1a   : > { %s6614_s15 = scalar_select %p5506_p12, 1, 0 }
  0x1b   : > { %s6615_s18 = scalar_select %p5515_p0, 1, 0 }
  0x1c   : > { %p5527_p2 = pneg %p5506_p12 }
  0x1d   : > { %s5180_s21 = scalar_lea.hbm %s6616_s4, 768 }
  0x1e   : > { %p5181_p1 = scmp.ne.s32.totalorder %s6616_s4, %s5180_s21  ;;  %p5187_p6 = scmp.lt.u32.totalorder %s5180_s21, %s6616_s4 }
  0x20   : > { %p5183_p3 = pnand %p5527_p2, %p5181_p1 }
  0x22   : > { %p5184_p4 = pneg %p5183_p3 }
  0x24   : > { %p5189_p7 = pnand %p5187_p6, %p5184_p4 }
  0x26   : > { %5192 = shalt.err (!%p5189_p7)
}
  0x27   : > { %s5193_s10 = scalar_lea.vmem %s235_s14, 768  ;;  %p5201_p5 = scmp.lt.s32.totalorder %s235_s14, %s235_s14 }
  0x28   : > { %p5194_p11 = scmp.ne.s32.totalorder %s235_s14, %s5193_s10  ;;  %p5202_p8 = scmp.lt.s32.totalorder %s5193_s10, %s5193_s10 }
  0x2a   : > { %p5196_p13 = pnand %p5194_p11, %p5527_p2  ;;  %p5203_p10 = por %p5202_p8, %p5201_p5 }
  0x2c   : > { %p5197_p9 = pneg %p5196_p13 }
  0x2e   : > { %p5204_p0 = pnand %p5203_p10, %p5197_p9 }
  0x30   : > { %5207 = shalt.err (!%p5204_p0)
}
  0x31   : > { %s5399_s13 = smov 384   ;;  %s5400_s19 = smov 24  }
  0x32   : > { %4621 = dma.hbm_to_vmem [thread:$0]  (!%p5506_p12), %s6616_s4, 768, %s235_s14, [#allocation10], %s5399_s13, %s5399_s13, %s5400_s19  }
  0x33   : > { %s4591_s22 = smul.u32 2304, %s264_s17  ;;  %s5401_s30 = smov [#allocation3]  }
  0x34   : > { %s4286_s23 = smul.u32 384, %s5396_s27  ;;  %s218_s8 = sshll.u32 %s5401_s30, 4  ;;  %s5556_s8 = int_to_ptr.vmem [resolvable:$true] %s218_s8 }
  0x35   : > { %s6618_s1 = sld [smem:[#allocation19_spill]]  ;;  %s266_s29 = scalar_lea.vmem [#allocation6], %s4591_s22 }
  0x36   : > { %s273_s7 = sshll.u32 %s266_s29, 4  ;;  %s6619_s14 = sand.u32 1, %s5396_s27   ;;  %s5554_s7 = int_to_ptr.vmem [resolvable:$true] %s273_s7 }
  0x37   : > { %s5560_s20 = scalar_lea.sflag [#allocation7], %s6619_s14  ;;  %p6620_p8 = scmp.ne.s32.totalorder %s6615_s18, 0 }
  0x39   : > { %p6604_p9 = pneg %p6620_p8 }
  0x3b   : > { %s5552_s9 = scalar_lea.hbm %s6618_s1, %s4286_s23  ;;  %s5213_s22 = scalar_lea.hbm %s6618_s1, 110592 }
  0x3c   : > { %s5208_s21 = scalar_lea.hbm %s5552_s9, 36864  ;;  %p5214_p1 = scmp.lt.u32.totalorder %s5552_s9, %s6618_s1 }
  0x3d   : > { %p5209_p5 = scmp.ne.s32.totalorder %s5552_s9, %s5208_s21  ;;  %p5215_p3 = scmp.lt.u32.totalorder %s5213_s22, %s5208_s21 }
  0x3e   : > { %p5217_p6 = scmp.lt.u32.totalorder %s5208_s21, %s5552_s9 }
  0x3f   : > { %p5211_p10 = pnand %p6604_p9, %p5209_p5  ;;  %p5216_p4 = por %p5215_p3, %p5214_p1 }
  0x41   : > { %p5212_p0 = pneg %p5211_p10  ;;  %p5218_p7 = por %p5217_p6, %p5216_p4 }
  0x43   : > { %p5219_p11 = pnand %p5218_p7, %p5212_p0 }
  0x45   : > { %5222 = shalt.err (!%p5219_p11)
}
  0x46   : > { %s5223_s10 = scalar_lea.vmem %s5554_s7, 36864  ;;  %s5402_s14 = smov [#allocation6]  }
  0x47   : > { %p5224_p13 = scmp.ne.s32.totalorder %s5554_s7, %s5223_s10  ;;  %s5228_s16 = sshll.u32 %s5402_s14, 4  ;;  %s5229_s16 = int_to_ptr.vmem [resolvable:$false] %s5228_s16 }
  0x48   : > { %s5230_s23 = scalar_lea.vmem %s5229_s16, 73728  ;;  %p5231_p12 = scmp.lt.s32.totalorder %s5554_s7, %s5229_s16 }
  0x49   : > { %p5226_p5 = pnand %p5224_p13, %p6604_p9  ;;  %p5232_p1 = scmp.lt.s32.totalorder %s5230_s23, %s5223_s10 }
  0x4b   : > { %p5227_p10 = pneg %p5226_p5  ;;  %p5233_p3 = por %p5232_p1, %p5231_p12 }
  0x4d   : > { %p5234_p4 = pnand %p5233_p3, %p5227_p10 }
  0x4f   : > { %5237 = shalt.err (!%p5234_p4)
}
  0x50   : > { %s5403_s21 = smov 1152   ;;  %s5238_s30 = scalar_lea.hbm %s6587_s0, 1536 }
  0x51   : > { %4628 = dma.hbm_to_vmem [thread:$0]  (!%p6620_p8), %s5552_s9, 36864, %s5554_s7, %s5560_s20, %s5403_s21, %s5399_s13, %s5400_s19  }
  0x52   : > { %p5239_p12 = scmp.ne.s32.totalorder %s6587_s0, %s5238_s30  ;;  %p5245_p7 = scmp.lt.u32.totalorder %s5238_s30, %s6587_s0 }
  0x54   : > { %p5241_p0 = pnand %p5239_p12, %p5527_p2 }
  0x56   : > { %p5242_p6 = pneg %p5241_p0 }
  0x58   : > { %p5247_p11 = pnand %p5245_p7, %p5242_p6 }
  0x5a   : > { %5250 = shalt.err (!%p5247_p11)
}
  0x5b   : > { %s5251_s7 = scalar_lea.vmem %s5556_s8, 1536  ;;  %p5259_p1 = scmp.lt.s32.totalorder %s5556_s8, %s5556_s8 }
  0x5c   : > { %p5252_p13 = scmp.ne.s32.totalorder %s5556_s8, %s5251_s7  ;;  %p5260_p3 = scmp.lt.s32.totalorder %s5251_s7, %s5251_s7 }
  0x5e   : > { %p5254_p5 = pnand %p5252_p13, %p5527_p2  ;;  %p5261_p4 = por %p5260_p3, %p5259_p1 }
  0x60   : > { %p5255_p10 = pneg %p5254_p5 }
  0x62   : > { %p5262_p12 = pnand %p5261_p4, %p5255_p10 }
  0x64   : > { %5265 = shalt.err (!%p5262_p12)
}
  0x65   : > { %s5404_s9 = smov 768   ;;  %s5405_s13 = smov 48  }
  0x66   : > { %p6621_p0 = scmp.ne.s32.totalorder %s6614_s15, 0  ;;  %s4592_s22 = smul.u32 6, %s264_s17 }
  0x67   : > { %s5406_s29 = smov [#allocation11]   ;;  %s4287_s14 = smul.u32 96, %s5396_s27 }
  0x68   : > { %4618 = dma.hbm_to_vmem [thread:$0]  (!%p6621_p0), %s6587_s0, 1536, %s5556_s8, [#allocation4], %s5404_s9, %s5404_s9, %s5405_s13  }
  0x69   : > { %s251_s30 = sshll.u32 %s5406_s29, 4  ;;  %s5266_s23 = scalar_lea.hbm %s6593_s6, 16  ;;  %s252_s30 = int_to_ptr.vmem [resolvable:$true] %s251_s30 }
  0x6a   : > { %p5267_p6 = scmp.ne.s32.totalorder %s6593_s6, %s5266_s23  ;;  %p5273_p13 = scmp.lt.u32.totalorder %s5266_s23, %s6593_s6 }
  0x6c   : > { %p5269_p7 = pnand %p5267_p6, %p5527_p2 }
  0x6e   : > { %p5270_p11 = pneg %p5269_p7 }
  0x70   : > { %p5275_p5 = pnand %p5273_p13, %p5270_p11 }
  0x72   : > { %5278 = shalt.err (!%p5275_p5)
}
  0x73   : > { %s5279_s17 = scalar_lea.vmem %s252_s30, 16  ;;  %s5286_s27 = scalar_lea.vmem %s252_s30, 32 }
  0x74   : > { %p5280_p10 = scmp.ne.s32.totalorder %s252_s30, %s5279_s17  ;;  %p5287_p4 = scmp.lt.s32.totalorder %s252_s30, %s252_s30 }
  0x75   : > { %p5288_p12 = scmp.lt.s32.totalorder %s5286_s27, %s5279_s17 }
  0x76   : > { %p5282_p1 = pnand %p5280_p10, %p5527_p2 }
  0x77   : > { %p5289_p9 = por %p5288_p12, %p5287_p4 }
  0x78   : > { %p5283_p3 = pneg %p5282_p1 }
  0x7a   : > { %p5290_p8 = pnand %p5289_p9, %p5283_p3 }
  0x7c   : > { %5293 = shalt.err (!%p5290_p8)
}
  0x7d   : > { %4624 = dma.hbm_to_vmem [thread:$0]  (!%p6621_p0), %s6593_s6, 16, %s252_s30, [#allocation10]  }
  0x7e   : > { %s5637_s13 = scalar_lea.hbm %s6589_s2, %s4287_s14  ;;  %s287_s24 = scalar_lea.vmem [#allocation8], %s4592_s22 }
  0x7f   : > { %s295_s21 = sshll.u32 %s287_s24, 4  ;;  %s5294_s29 = scalar_lea.hbm %s5637_s13, 96  ;;  %s296_s21 = int_to_ptr.vmem [resolvable:$true] %s295_s21 }
  0x80   : > { %p5295_p2 = scmp.ne.s32.totalorder %s5637_s13, %s5294_s29  ;;  %p6622_p8 = scmp.ne.s32.totalorder %s6615_s18, 0 }
  0x81   : > { %s5299_s16 = scalar_lea.hbm %s6589_s2, 288  ;;  %p5300_p0 = scmp.lt.u32.totalorder %s5637_s13, %s6589_s2 }
  0x82   : > { %p6623_p9 = pneg %p6622_p8  ;;  %p5301_p11 = scmp.lt.u32.totalorder %s5299_s16, %s5294_s29 }
  0x83   : > { %p5303_p5 = scmp.lt.u32.totalorder %s5294_s29, %s5637_s13 }
  0x84   : > { %p5297_p6 = pnand %p5295_p2, %p6623_p9  ;;  %p5302_p13 = por %p5301_p11, %p5300_p0 }
  0x86   : > { %p5298_p7 = pneg %p5297_p6  ;;  %p5304_p10 = por %p5303_p5, %p5302_p13 }
  0x88   : > { %p5305_p1 = pnand %p5304_p10, %p5298_p7 }
  0x8a   : > { %5308 = shalt.err (!%p5305_p1)
}
  0x8b   : > { %s5309_s22 = scalar_lea.vmem %s296_s21, 96  ;;  %p6624_p4 = pmov %p6623_p9 }
  0x8c   : > { %p5310_p3 = scmp.ne.s32.totalorder %s296_s21, %s5309_s22  ;;  %s5407_s23 = smov [#allocation8]  }
  0x8d   : > { %s5314_s7 = sshll.u32 %s5407_s23, 4  ;;  %s5315_s7 = int_to_ptr.vmem [resolvable:$false] %s5314_s7 }
  0x8e   : > { %p5312_p12 = pnand %p5310_p3, %p6624_p4  ;;  %s5316_s19 = scalar_lea.vmem %s5315_s7, 192 }
  0x8f   : > { %p5317_p9 = scmp.lt.s32.totalorder %s296_s21, %s5315_s7  ;;  %p5318_p6 = scmp.lt.s32.totalorder %s5316_s19, %s5309_s22 }
  0x90   : > { %p5313_p2 = pneg %p5312_p12 }
  0x91   : > { %p5319_p0 = por %p5318_p6, %p5317_p9 }
  0x93   : > { %p5320_p11 = pnand %p5319_p0, %p5313_p2 }
  0x95   : > { %5323 = shalt.err (!%p5320_p11)
}
  0x96   : > { %4631 = dma.hbm_to_vmem [thread:$0]  (!%p6622_p8), %s5637_s13, 96, %s296_s21, %s5560_s20  }
  0x97   : > { %p6625_p7 = scmp.ne.s32.totalorder %s6613_s12, 0 }
  0x98   : > { %p6626_p13 = scmp.eq.s32.totalorder (!%p6625_p7), %s5469_s28, 0 }
  0x99   : > { %304 = sbr.rel (%p6625_p7) target bundleno = 1573 (0x625), region = 48 }
  0xa0   : > { %5367 = dma.done.wait (%p6626_p13), [#allocation4], 1536   ;;  %p6627_p5 = pmov %p6626_p13 }
  0xa1   : > { %s310_s17 = sand.u32 1, %s5469_s28   ;;  %s312_s27 = sand.u32 1, %s5388_s25  }
  0xa2   : > { %5369 = vsyncadd (%p6627_p5), [#allocation4], 4294965760  ;;  %s4593_s1 = smul.u32 2304, %s312_s27  ;;  %s311_s8 = scalar_lea.sflag [#allocation7], %s310_s17 }
  0xa3   : > { %p6628_p10 = scmp.ne.s32.totalorder %s6612_s11, 0 }
  0xa4   : > { %s5667_s18 = scalar_lea.vmem [#allocation6], %s4593_s1 }
  0xa5   : > { %5371 = dma.done.wait (%p6628_p10), %s311_s8, 36960  }
  0xa6   : > { %5373 = vsyncadd (%p6628_p10), %s311_s8, 4294930336  ;;  %s5673_s12 = smul.u32 6, %s312_s27  ;;  %p6629_p8 = pmov %p6627_p5 }
  0xa8   : > { %s323_s20 = scalar_lea.vmem [#allocation8], %s5673_s12 }
  0xa9   : > { %5375 = dma.done.wait (%p6629_p8), [#allocation10], 784   ;;  %p6630_p1 = pmov %p6627_p5 }
  0xaa   : > { %v4683_v0 = vld [vmem:[%s5667_s18 + $0x4] ss:$24 sps:$4 sm:$0xff]   ;;  %v4687_v2 = vld [vmem:[%s5667_s18] ss:$24 sps:$4 sm:$0xff]   ;;  %v4689_v4 = vld [vmem:[%s5667_s18 + $0x34] ss:$24 sps:$4 sm:$0xff]  }
  0xab   : > { %5377 = vsyncadd (%p6630_p1), [#allocation10], 4294966512  ;;  %v4685_v1 = vld [vmem:[%s5667_s18 + $0x304] ss:$24 sps:$4 sm:$0xff]   ;;  %2143 = vmatprep.subr.bf16.mxu1 %v4683_v0  ;;  %v4688_v3 = vld [vmem:[%s5667_s18 + $0x300] ss:$24 sps:$4 sm:$0xff]  }
  0xac   : > { %2186 = vmatprep.subr.bf16.mxu0 %v4685_v1  ;;  %2144 = vmatpush1.bf16.msra.mxu1 %v4687_v2  ;;  %v4691_v5 = vld [vmem:[%s5667_s18 + $0x334] ss:$24 sps:$4 sm:$0xff]   ;;  %v4693_v6 = vld [vmem:[%s5667_s18 + $0x30] ss:$24 sps:$4 sm:$0xff]   ;;  %v4695_v8 = vld [vmem:[%s5667_s18 + $0x64] ss:$24 sps:$4 sm:$0xff]  }
  0xad   : > { %2187 = vmatpush1.bf16.msra.mxu0 %v4688_v3  ;;  %2145 = vmatprep.subr.bf16.mxu1 %v4689_v4  ;;  %v4694_v7 = vld [vmem:[%s5667_s18 + $0x330] ss:$24 sps:$4 sm:$0xff]   ;;  %v4697_v9 = vld [vmem:[%s5667_s18 + $0x364] ss:$24 sps:$4 sm:$0xff]   ;;  %v4699_v10 = vld [vmem:[%s5667_s18 + $0x60] ss:$24 sps:$4 sm:$0xff]  }
  0xae   : > { %2188 = vmatprep.subr.bf16.mxu0 %v4691_v5  ;;  %v4700_v11 = vld [vmem:[%s5667_s18 + $0x360] ss:$24 sps:$4 sm:$0xff]   ;;  %v4701_v12 = vld [vmem:[%s5667_s18 + $0x94] ss:$24 sps:$4 sm:$0xff]   ;;  %v4705_v14 = vld [vmem:[%s5667_s18 + $0x90] ss:$24 sps:$4 sm:$0xff]  }
  0xaf   : > { %v4703_v13 = vld [vmem:[%s5667_s18 + $0x394] ss:$24 sps:$4 sm:$0xff]   ;;  %v4706_v15 = vld [vmem:[%s5667_s18 + $0x390] ss:$24 sps:$4 sm:$0xff]   ;;  %v4707_v16 = vld [vmem:[%s5667_s18 + $0xc4] ss:$24 sps:$4 sm:$0xff]  }
  0xb0   : > { %2146 = vmatpush1.bf16.msra.mxu1 %v4693_v6  ;;  %v4709_v17 = vld [vmem:[%s5667_s18 + $0x3c4] ss:$24 sps:$4 sm:$0xff]   ;;  %v4711_v18 = vld [vmem:[%s5667_s18 + $0xc0] ss:$24 sps:$4 sm:$0xff]   ;;  %v4713_v20 = vld [vmem:[%s5667_s18 + $0xf4] ss:$24 sps:$4 sm:$0xff]  }
  0xb1   : > { %2189 = vmatpush1.bf16.msra.mxu0 %v4694_v7  ;;  %2147 = vmatprep.subr.bf16.mxu1 %v4695_v8  ;;  %v4712_v19 = vld [vmem:[%s5667_s18 + $0x3c0] ss:$24 sps:$4 sm:$0xff]   ;;  %v4715_v21 = vld [vmem:[%s5667_s18 + $0x3f4] ss:$24 sps:$4 sm:$0xff]   ;;  %v4717_v22 = vld [vmem:[%s5667_s18 + $0xf0] ss:$24 sps:$4 sm:$0xff]  }
  0xb2   : > { %2190 = vmatprep.subr.bf16.mxu0 %v4697_v9  ;;  %v4718_v23 = vld [vmem:[%s5667_s18 + $0x3f0] ss:$24 sps:$4 sm:$0xff]   ;;  %v4719_v24 = vld [vmem:[%s5667_s18 + $0x124] ss:$24 sps:$4 sm:$0xff]   ;;  %v4723_v26 = vld [vmem:[%s5667_s18 + $0x120] ss:$24 sps:$4 sm:$0xff]  }
  0xb3   : > { %v4721_v25 = vld [vmem:[%s5667_s18 + $0x424] ss:$24 sps:$4 sm:$0xff]   ;;  %v4724_v27 = vld [vmem:[%s5667_s18 + $0x420] ss:$24 sps:$4 sm:$0xff]   ;;  %v4725_v28 = vld [vmem:[%s5667_s18 + $0x154] ss:$24 sps:$4 sm:$0xff]  }
  0xb4   : > { %2148 = vmatpush1.bf16.msra.mxu1 %v4699_v10  ;;  %v4727_v29 = vld [vmem:[%s5667_s18 + $0x454] ss:$24 sps:$4 sm:$0xff]   ;;  %v4729_v30 = vld [vmem:[%s5667_s18 + $0x150] ss:$24 sps:$4 sm:$0xff]   ;;  %v4731_v32 = vld [vmem:[%s5667_s18 + $0x184] ss:$24 sps:$4 sm:$0xff]  }
  0xb5   : > { %2191 = vmatpush1.bf16.msra.mxu0 %v4700_v11  ;;  %2149 = vmatprep.subr.bf16.mxu1 %v4701_v12  ;;  %v4730_v31 = vld [vmem:[%s5667_s18 + $0x450] ss:$24 sps:$4 sm:$0xff]   ;;  %v4733_v33 = vld [vmem:[%s5667_s18 + $0x484] ss:$24 sps:$4 sm:$0xff]   ;;  %v4735_v34 = vld [vmem:[%s5667_s18 + $0x180] ss:$24 sps:$4 sm:$0xff]  }
  0xb6   : > { %2192 = vmatprep.subr.bf16.mxu0 %v4703_v13  ;;  %v4736_v35 = vld [vmem:[%s5667_s18 + $0x480] ss:$24 sps:$4 sm:$0xff]   ;;  %v4737_v36 = vld [vmem:[%s5667_s18 + $0x1b4] ss:$24 sps:$4 sm:$0xff]   ;;  %v4741_v38 = vld [vmem:[%s5667_s18 + $0x1b0] ss:$24 sps:$4 sm:$0xff]  }
  0xb7   : > { %v4739_v37 = vld [vmem:[%s5667_s18 + $0x4b4] ss:$24 sps:$4 sm:$0xff]   ;;  %v4742_v39 = vld [vmem:[%s5667_s18 + $0x4b0] ss:$24 sps:$4 sm:$0xff]   ;;  %v4743_v40 = vld [vmem:[%s5667_s18 + $0x1e4] ss:$24 sps:$4 sm:$0xff]  }
  0xb8   : > { %2150 = vmatpush1.bf16.msra.mxu1 %v4705_v14  ;;  %v4745_v41 = vld [vmem:[%s5667_s18 + $0x4e4] ss:$24 sps:$4 sm:$0xff]   ;;  %v4747_v42 = vld [vmem:[%s5667_s18 + $0x1e0] ss:$24 sps:$4 sm:$0xff]   ;;  %v4749_v44 = vld [vmem:[%s5667_s18 + $0x214] ss:$24 sps:$4 sm:$0xff]  }
  0xb9   : > { %2193 = vmatpush1.bf16.msra.mxu0 %v4706_v15  ;;  %2151 = vmatprep.subr.bf16.mxu1 %v4707_v16  ;;  %v4748_v43 = vld [vmem:[%s5667_s18 + $0x4e0] ss:$24 sps:$4 sm:$0xff]   ;;  %v4751_v45 = vld [vmem:[%s5667_s18 + $0x514] ss:$24 sps:$4 sm:$0xff]   ;;  %v4753_v46 = vld [vmem:[%s5667_s18 + $0x210] ss:$24 sps:$4 sm:$0xff]  }
  0xba   : > { %2194 = vmatprep.subr.bf16.mxu0 %v4709_v17  ;;  %v4754_v47 = vld [vmem:[%s5667_s18 + $0x510] ss:$24 sps:$4 sm:$0xff]   ;;  %v372_v49 = vld [vmem:[#allocation3 + $0x38] sm:$0xff]  ;;  %v4761_v58 = vld [vmem:[%s5667_s18 + $0x274] ss:$24 sps:$4 sm:$0xff]   ;;  %p6631_p3 = scmp.ne.s32.totalorder %s5469_s28, 0 }
  0xbb   : > { %v366_v48 = vld [vmem:[#allocation3 + $0x8] sm:$0xff]  ;;  %v368_v50 = vld [vmem:[#allocation3 + $0x18] sm:$0xff]  ;;  %v365_v6 = vld [vmem:[#allocation3] sm:$0xff] }
  0xbc   : > { %2152 = vmatpush1.bf16.msra.mxu1 %v4711_v18  ;;  %v374_v51 = vld [vmem:[#allocation3 + $0x48] sm:$0xff]  ;;  %v4755_v52 = vld [vmem:[%s5667_s18 + $0x244] ss:$24 sps:$4 sm:$0xff]   ;;  %v5729_v53 = vpack.c.bf16 %v372_v49, %v366_v48  ;;  %v4759_v56 = vld [vmem:[%s5667_s18 + $0x240] ss:$24 sps:$4 sm:$0xff]  }
  0xbd   : > { %2195 = vmatpush1.bf16.msra.mxu0 %v4712_v19  ;;  %2153 = vmatprep.subr.bf16.mxu1 %v4713_v20  ;;  %v5731_v54 = vpack.c.bf16 %v374_v51, %v368_v50  ;;  %v4757_v55 = vld [vmem:[%s5667_s18 + $0x544] ss:$24 sps:$4 sm:$0xff]   ;;  %v4760_v57 = vld [vmem:[%s5667_s18 + $0x540] ss:$24 sps:$4 sm:$0xff]   ;;  %v4763_v59 = vld [vmem:[%s5667_s18 + $0x574] ss:$24 sps:$4 sm:$0xff]  }
  0xbe   : > { %2196 = vmatprep.subr.bf16.mxu0 %v4715_v21  ;;  %2175 = vmatprep.mubr.bf16.mxu1 %v5729_v53  ;;  %v4765_v60 = vld [vmem:[%s5667_s18 + $0x270] ss:$24 sps:$4 sm:$0xff]   ;;  %v4767_v62 = vld [vmem:[%s5667_s18 + $0x2a4] ss:$24 sps:$4 sm:$0xff]   ;;  %v4771_v0 = vld [vmem:[%s5667_s18 + $0x2a0] ss:$24 sps:$4 sm:$0xff]  }
  0xbf   : > { %2218 = vmatprep.mubr.bf16.mxu0 %v5731_v54  ;;  %v4766_v61 = vld [vmem:[%s5667_s18 + $0x570] ss:$24 sps:$4 sm:$0xff]   ;;  %v4769_v63 = vld [vmem:[%s5667_s18 + $0x5a4] ss:$24 sps:$4 sm:$0xff]   ;;  %v4772_v1 = vld [vmem:[%s5667_s18 + $0x5a0] ss:$24 sps:$4 sm:$0xff]  }
  0xc0   : > { %2154 = vmatpush1.bf16.msra.mxu1 %v4717_v22  ;;  %v4773_v2 = vld [vmem:[%s5667_s18 + $0x2d4] ss:$24 sps:$4 sm:$0xff]   ;;  %v4777_v4 = vld [vmem:[%s5667_s18 + $0x2d0] ss:$24 sps:$4 sm:$0xff]   ;;  %v4781_v7 = vld [vmem:[%s5667_s18 + $0x604] ss:$24 sps:$4 sm:$0xff]  }
  0xc1   : > { %2197 = vmatpush1.bf16.msra.mxu0 %v4718_v23  ;;  %2155 = vmatprep.subr.bf16.mxu1 %v4719_v24  ;;  %v4775_v3 = vld [vmem:[%s5667_s18 + $0x5d4] ss:$24 sps:$4 sm:$0xff]   ;;  %v4778_v5 = vld [vmem:[%s5667_s18 + $0x5d0] ss:$24 sps:$4 sm:$0xff]   ;;  %v373_v10 = vld [vmem:[#allocation3 + $0x40] sm:$0xff] }
  0xc2   : > { %2198 = vmatprep.subr.bf16.mxu0 %v4721_v25  ;;  %v371_v8 = vld [vmem:[#allocation3 + $0x30] sm:$0xff]  ;;  %v4784_v11 = vld [vmem:[%s5667_s18 + $0xc] ss:$24 sps:$4 sm:$0xff]   ;;  %v4779_v12 = vld [vmem:[%s5667_s18 + $0x600] ss:$24 sps:$4 sm:$0xff]  }
  0xc3   : > { %v367_v9 = vld [vmem:[#allocation3 + $0x10] sm:$0xff]  ;;  %v4782_v13 = vld [vmem:[%s5667_s18 + $0x8] ss:$24 sps:$4 sm:$0xff]   ;;  %v5754_v14 = vpack.c.bf16 %v371_v8, %v365_v6  ;;  %v4793_v20 = vld [vmem:[%s5667_s18 + $0x664] ss:$24 sps:$4 sm:$0xff]  }
  0xc4   : > { %2156 = vmatpush1.bf16.msra.mxu1 %v4723_v26  ;;  %v5756_v15 = vpack.c.bf16 %v373_v10, %v367_v9  ;;  %v4787_v16 = vld [vmem:[%s5667_s18 + $0x634] ss:$24 sps:$4 sm:$0xff]   ;;  %v4785_v18 = vld [vmem:[%s5667_s18 + $0x630] ss:$24 sps:$4 sm:$0xff]   ;;  %v4791_v22 = vld [vmem:[%s5667_s18 + $0x660] ss:$24 sps:$4 sm:$0xff]  }
  0xc5   : > { %2199 = vmatpush1.bf16.msra.mxu0 %v4724_v27  ;;  %2157 = vmatprep.subr.bf16.mxu1 %v4725_v28  ;;  %v4790_v17 = vld [vmem:[%s5667_s18 + $0x3c] ss:$24 sps:$4 sm:$0xff]   ;;  %v4788_v19 = vld [vmem:[%s5667_s18 + $0x38] ss:$24 sps:$4 sm:$0xff]   ;;  %v4796_v21 = vld [vmem:[%s5667_s18 + $0x6c] ss:$24 sps:$4 sm:$0xff]  }
  0xc6   : > { %2200 = vmatprep.subr.bf16.mxu0 %v4727_v29  ;;  %v4794_v23 = vld [vmem:[%s5667_s18 + $0x68] ss:$24 sps:$4 sm:$0xff]   ;;  %v4799_v24 = vld [vmem:[%s5667_s18 + $0x694] ss:$24 sps:$4 sm:$0xff]   ;;  %v4800_v27 = vld [vmem:[%s5667_s18 + $0x98] ss:$24 sps:$4 sm:$0xff]  }
  0xc7   : > { %v4802_v25 = vld [vmem:[%s5667_s18 + $0x9c] ss:$24 sps:$4 sm:$0xff]   ;;  %v4797_v26 = vld [vmem:[%s5667_s18 + $0x690] ss:$24 sps:$4 sm:$0xff]   ;;  %v4808_v29 = vld [vmem:[%s5667_s18 + $0xcc] ss:$24 sps:$4 sm:$0xff]  }
  0xc8   : > { %2158 = vmatpush1.bf16.msra.mxu1 %v4729_v30  ;;  %v4805_v28 = vld [vmem:[%s5667_s18 + $0x6c4] ss:$24 sps:$4 sm:$0xff]   ;;  %v4803_v30 = vld [vmem:[%s5667_s18 + $0x6c0] ss:$24 sps:$4 sm:$0xff]   ;;  %v4835_v51 = vld [vmem:[%s5667_s18 + $0x7b4] ss:$24 sps:$4 sm:$0xff]  }
  0xc9   : > { %2201 = vmatpush1.bf16.msra.mxu0 %v4730_v31  ;;  %2159 = vmatprep.subr.bf16.mxu1 %v4731_v32  ;;  %v4806_v31 = vld [vmem:[%s5667_s18 + $0xc8] ss:$24 sps:$4 sm:$0xff]   ;;  %v4811_v32 = vld [vmem:[%s5667_s18 + $0x6f4] ss:$24 sps:$4 sm:$0xff]   ;;  %v4860_v8 = vld [vmem:[%s5667_s18 + $0x278] ss:$24 sps:$4 sm:$0xff]  }
  0xca   : > { %2202 = vmatprep.subr.bf16.mxu0 %v4733_v33  ;;  %v4814_v33 = vld [vmem:[%s5667_s18 + $0xfc] ss:$24 sps:$4 sm:$0xff]   ;;  %v4832_v48 = vld [vmem:[%s5667_s18 + $0x18c] ss:$24 sps:$4 sm:$0xff]   ;;  %v4827_v49 = vld [vmem:[%s5667_s18 + $0x780] ss:$24 sps:$4 sm:$0xff]  }
  0xcb   : > { %v4830_v50 = vld [vmem:[%s5667_s18 + $0x188] ss:$24 sps:$4 sm:$0xff]   ;;  %v4862_v6 = vld [vmem:[%s5667_s18 + $0x27c] ss:$24 sps:$4 sm:$0xff]   ;;  %v4868_v10 = vld [vmem:[%s5667_s18 + $0x2ac] ss:$24 sps:$4 sm:$0xff]  }
  0xcc   : > { %2160 = vmatpush1.bf16.msra.mxu1 %v4735_v34  ;;  %v4809_v34 = vld [vmem:[%s5667_s18 + $0x6f0] ss:$24 sps:$4 sm:$0xff]   ;;  %v4865_v9 = vld [vmem:[%s5667_s18 + $0x8a4] ss:$24 sps:$4 sm:$0xff]  }
  0xcd   : > { %2203 = vmatpush1.bf16.msra.mxu0 %v4736_v35  ;;  %2161 = vmatprep.subr.bf16.mxu1 %v4737_v36  ;;  %v4812_v35 = vld [vmem:[%s5667_s18 + $0xf8] ss:$24 sps:$4 sm:$0xff]   ;;  %v4817_v36 = vld [vmem:[%s5667_s18 + $0x724] ss:$24 sps:$4 sm:$0xff]  }
  0xce   : > { %2204 = vmatprep.subr.bf16.mxu0 %v4739_v37  ;;  %v4820_v37 = vld [vmem:[%s5667_s18 + $0x12c] ss:$24 sps:$4 sm:$0xff]  }
  0xd0   : > { %2162 = vmatpush1.bf16.msra.mxu1 %v4741_v38  ;;  %v4815_v38 = vld [vmem:[%s5667_s18 + $0x720] ss:$24 sps:$4 sm:$0xff]  }
  0xd1   : > { %2205 = vmatpush1.bf16.msra.mxu0 %v4742_v39  ;;  %2163 = vmatprep.subr.bf16.mxu1 %v4743_v40  ;;  %v4818_v39 = vld [vmem:[%s5667_s18 + $0x128] ss:$24 sps:$4 sm:$0xff]   ;;  %v4823_v40 = vld [vmem:[%s5667_s18 + $0x754] ss:$24 sps:$4 sm:$0xff]  }
  0xd2   : > { %2206 = vmatprep.subr.bf16.mxu0 %v4745_v41  ;;  %v370_v41 = vld [vmem:[#allocation3 + $0x28] sm:$0xff] }
  0xd4   : > { %2164 = vmatpush1.bf16.msra.mxu1 %v4747_v42  ;;  %v376_v42 = vld [vmem:[#allocation3 + $0x58] sm:$0xff] }
  0xd5   : > { %2207 = vmatpush1.bf16.msra.mxu0 %v4748_v43  ;;  %2165 = vmatprep.subr.bf16.mxu1 %v4749_v44  ;;  %v4826_v43 = vld [vmem:[%s5667_s18 + $0x15c] ss:$24 sps:$4 sm:$0xff]   ;;  %v5787_v44 = vpack.c.bf16 %v376_v42, %v370_v41 }
  0xd6   : > { %2208 = vmatprep.subr.bf16.mxu0 %v4751_v45  ;;  %v4821_v45 = vld [vmem:[%s5667_s18 + $0x750] ss:$24 sps:$4 sm:$0xff]   ;;  %v4907_v41 = vld [vmem:[%s5667_s18 + $0x3fc] ss:$24 sps:$4 sm:$0xff]  }
  0xd7   : > { %v4910_v42 = vld [vmem:[%s5667_s18 + $0x104] ss:$24 sps:$4 sm:$0xff]  }
  0xd8   : > { %2166 = vmatpush1.bf16.msra.mxu1 %v4753_v46  ;;  %v4824_v46 = vld [vmem:[%s5667_s18 + $0x158] ss:$24 sps:$4 sm:$0xff]  }
  0xd9   : > { %2209 = vmatpush1.bf16.msra.mxu0 %v4754_v47  ;;  %2167 = vmatprep.subr.bf16.mxu1 %v4755_v52  ;;  %v4829_v47 = vld [vmem:[%s5667_s18 + $0x784] ss:$24 sps:$4 sm:$0xff]  }
  0xda   : > { %2210 = vmatprep.subr.bf16.mxu0 %v4757_v55  ;;  %v4838_v52 = vld [vmem:[%s5667_s18 + $0x1bc] ss:$24 sps:$4 sm:$0xff]   ;;  %v4833_v55 = vld [vmem:[%s5667_s18 + $0x7b0] ss:$24 sps:$4 sm:$0xff]  }
  0xdc   : > { %2168 = vmatpush1.bf16.msra.mxu1 %v4759_v56  ;;  %v4836_v56 = vld [vmem:[%s5667_s18 + $0x1b8] ss:$24 sps:$4 sm:$0xff]  }
  0xdd   : > { %2211 = vmatpush1.bf16.msra.mxu0 %v4760_v57  ;;  %2169 = vmatprep.subr.bf16.mxu1 %v4761_v58  ;;  %v4841_v57 = vld [vmem:[%s5667_s18 + $0x7e4] ss:$24 sps:$4 sm:$0xff]  }
  0xde   : > { %2212 = vmatprep.subr.bf16.mxu0 %v4763_v59  ;;  %v4844_v58 = vld [vmem:[%s5667_s18 + $0x1ec] ss:$24 sps:$4 sm:$0xff]   ;;  %v4839_v59 = vld [vmem:[%s5667_s18 + $0x7e0] ss:$24 sps:$4 sm:$0xff]  }
  0xe0   : > { %2170 = vmatpush1.bf16.msra.mxu1 %v4765_v60  ;;  %v4842_v60 = vld [vmem:[%s5667_s18 + $0x1e8] ss:$24 sps:$4 sm:$0xff]  }
  0xe1   : > { %2213 = vmatpush1.bf16.msra.mxu0 %v4766_v61  ;;  %2171 = vmatprep.subr.bf16.mxu1 %v4767_v62  ;;  %v4847_v61 = vld [vmem:[%s5667_s18 + $0x814] ss:$24 sps:$4 sm:$0xff]  }
  0xe2   : > { %2214 = vmatprep.subr.bf16.mxu0 %v4769_v63  ;;  %v4850_v62 = vld [vmem:[%s5667_s18 + $0x21c] ss:$24 sps:$4 sm:$0xff]   ;;  %v4845_v63 = vld [vmem:[%s5667_s18 + $0x810] ss:$24 sps:$4 sm:$0xff]  }
  0xe4   : > { %2172 = vmatpush1.bf16.msra.mxu1 %v4771_v0  ;;  %v4848_v0 = vld [vmem:[%s5667_s18 + $0x218] ss:$24 sps:$4 sm:$0xff]  }
  0xe5   : > { %2215 = vmatpush1.bf16.msra.mxu0 %v4772_v1  ;;  %2173 = vmatprep.subr.bf16.mxu1 %v4773_v2  ;;  %v4853_v1 = vld [vmem:[%s5667_s18 + $0x844] ss:$24 sps:$4 sm:$0xff]  }
  0xe6   : > { %2216 = vmatprep.subr.bf16.mxu0 %v4775_v3  ;;  %v4856_v2 = vld [vmem:[%s5667_s18 + $0x24c] ss:$24 sps:$4 sm:$0xff]   ;;  %v4851_v3 = vld [vmem:[%s5667_s18 + $0x840] ss:$24 sps:$4 sm:$0xff]  }
  0xe8   : > { %2174 = vmatpush1.bf16.msra.mxu1 %v4777_v4  ;;  %v4854_v4 = vld [vmem:[%s5667_s18 + $0x248] ss:$24 sps:$4 sm:$0xff]  }
  0xe9   : > { %2217 = vmatpush1.bf16.msra.mxu0 %v4778_v5  ;;  %2272 = vmatprep.subr.bf16.mxu1 %v4784_v11  ;;  %v4859_v5 = vld [vmem:[%s5667_s18 + $0x874] ss:$24 sps:$4 sm:$0xff]   ;;  %v4863_v11 = vld [vmem:[%s5667_s18 + $0x8a0] ss:$24 sps:$4 sm:$0xff]  }
  0xea   : > { %2229 = vmatprep.subr.bf16.mxu0 %v4781_v7  ;;  %v4857_v7 = vld [vmem:[%s5667_s18 + $0x870] ss:$24 sps:$4 sm:$0xff]  }
  0xeb   : > { %2176 = vmatmul.mubr.bf16.vlgmr.msra.gmra.mrb[0].mxu1 %v5754_v14 }
  0xec   : > { %2219 = vmatmul.mubr.bf16.vlgmr.msra.gmra.mrb[0].mxu0 %v5756_v15  ;;  %2273 = vmatpush1.bf16.msra.mxu1 %v4782_v13  ;;  %v4871_v13 = vld [vmem:[%s5667_s18 + $0x8d4] ss:$24 sps:$4 sm:$0xff]  }
  0xed   : > { %2230 = vmatpush1.bf16.msra.mxu0 %v4779_v12  ;;  %2274 = vmatprep.subr.bf16.mxu1 %v4790_v17  ;;  %v4866_v12 = vld [vmem:[%s5667_s18 + $0x2a8] ss:$24 sps:$4 sm:$0xff]  }
  0xee   : > { %2231 = vmatprep.subr.bf16.mxu0 %v4787_v16  ;;  %2304 = vmatprep.mubr.bf16.mxu1 %v5729_v53  ;;  %v4874_v16 = vld [vmem:[%s5667_s18 + $0x2dc] ss:$24 sps:$4 sm:$0xff]   ;;  %v4869_v17 = vld [vmem:[%s5667_s18 + $0x8d0] ss:$24 sps:$4 sm:$0xff]  }
  0xef   : > { %2261 = vmatprep.mubr.bf16.mxu0 %v5787_v44 }
  0xf0   : > { %2275 = vmatpush1.bf16.msra.mxu1 %v4788_v19  ;;  %v369_v19 = vld [vmem:[#allocation3 + $0x20] sm:$0xff] }
  0xf1   : > { %2232 = vmatpush1.bf16.msra.mxu0 %v4785_v18  ;;  %2276 = vmatprep.subr.bf16.mxu1 %v4796_v21  ;;  %v4872_v18 = vld [vmem:[%s5667_s18 + $0x2d8] ss:$24 sps:$4 sm:$0xff]   ;;  %v4877_v21 = vld [vmem:[%s5667_s18 + $0x30c] ss:$24 sps:$4 sm:$0xff]  }
  0xf2   : > { %2233 = vmatprep.subr.bf16.mxu0 %v4793_v20  ;;  %v375_v20 = vld [vmem:[#allocation3 + $0x50] sm:$0xff] }
  0xf4   : > { %2277 = vmatpush1.bf16.msra.mxu1 %v4794_v23  ;;  %v5826_v23 = vpack.c.bf16 %v375_v20, %v369_v19  ;;  %v4964_v19 = vld [vmem:[%s5667_s18 + $0x2b4] ss:$24 sps:$4 sm:$0xff]   ;;  %v4959_v20 = vld [vmem:[%s5667_s18 + $0x5a8] ss:$24 sps:$4 sm:$0xff]  }
  0xf5   : > { %2234 = vmatpush1.bf16.msra.mxu0 %v4791_v22  ;;  %2278 = vmatprep.subr.bf16.mxu1 %v4802_v25  ;;  %v4880_v22 = vld [vmem:[%s5667_s18 + $0x14] ss:$24 sps:$4 sm:$0xff]   ;;  %v4878_v25 = vld [vmem:[%s5667_s18 + $0x10] ss:$24 sps:$4 sm:$0xff]  }
  0xf6   : > { %2235 = vmatprep.subr.bf16.mxu0 %v4799_v24  ;;  %v4875_v24 = vld [vmem:[%s5667_s18 + $0x308] ss:$24 sps:$4 sm:$0xff]  }
  0xf8   : > { %2279 = vmatpush1.bf16.msra.mxu1 %v4800_v27  ;;  %v4886_v27 = vld [vmem:[%s5667_s18 + $0x44] ss:$24 sps:$4 sm:$0xff]  }
  0xf9   : > { %2236 = vmatpush1.bf16.msra.mxu0 %v4797_v26  ;;  %2280 = vmatprep.subr.bf16.mxu1 %v4808_v29  ;;  %v4883_v26 = vld [vmem:[%s5667_s18 + $0x33c] ss:$24 sps:$4 sm:$0xff]   ;;  %v4884_v29 = vld [vmem:[%s5667_s18 + $0x40] ss:$24 sps:$4 sm:$0xff]  }
  0xfa   : > { %2237 = vmatprep.subr.bf16.mxu0 %v4805_v28  ;;  %v4881_v28 = vld [vmem:[%s5667_s18 + $0x338] ss:$24 sps:$4 sm:$0xff]  }
  0xfc   : > { %2281 = vmatpush1.bf16.msra.mxu1 %v4806_v31  ;;  %v4892_v31 = vld [vmem:[%s5667_s18 + $0x74] ss:$24 sps:$4 sm:$0xff]  }
  0xfd   : > { %2238 = vmatpush1.bf16.msra.mxu0 %v4803_v30  ;;  %2282 = vmatprep.subr.bf16.mxu1 %v4814_v33  ;;  %v4889_v30 = vld [vmem:[%s5667_s18 + $0x36c] ss:$24 sps:$4 sm:$0xff]   ;;  %v4890_v33 = vld [vmem:[%s5667_s18 + $0x70] ss:$24 sps:$4 sm:$0xff]  }
  0xfe   : > { %2239 = vmatprep.subr.bf16.mxu0 %v4811_v32  ;;  %v4887_v32 = vld [vmem:[%s5667_s18 + $0x368] ss:$24 sps:$4 sm:$0xff]  }
 0x100   : > { %2283 = vmatpush1.bf16.msra.mxu1 %v4812_v35  ;;  %v4898_v35 = vld [vmem:[%s5667_s18 + $0xa4] ss:$24 sps:$4 sm:$0xff]  }
 0x101   : > { %2240 = vmatpush1.bf16.msra.mxu0 %v4809_v34  ;;  %2284 = vmatprep.subr.bf16.mxu1 %v4820_v37  ;;  %v4895_v34 = vld [vmem:[%s5667_s18 + $0x39c] ss:$24 sps:$4 sm:$0xff]   ;;  %v4896_v37 = vld [vmem:[%s5667_s18 + $0xa0] ss:$24 sps:$4 sm:$0xff]  }
 0x102   : > { %2241 = vmatprep.subr.bf16.mxu0 %v4817_v36  ;;  %v4893_v36 = vld [vmem:[%s5667_s18 + $0x398] ss:$24 sps:$4 sm:$0xff]  }
 0x104   : > { %2285 = vmatpush1.bf16.msra.mxu1 %v4818_v39  ;;  %v4899_v39 = vld [vmem:[%s5667_s18 + $0x3c8] ss:$24 sps:$4 sm:$0xff]  }
 0x105   : > { %2242 = vmatpush1.bf16.msra.mxu0 %v4815_v38  ;;  %2286 = vmatprep.subr.bf16.mxu1 %v4826_v43  ;;  %v4904_v38 = vld [vmem:[%s5667_s18 + $0xd4] ss:$24 sps:$4 sm:$0xff]   ;;  %v4905_v43 = vld [vmem:[%s5667_s18 + $0x3f8] ss:$24 sps:$4 sm:$0xff]  }
 0x106   : > { %2243 = vmatprep.subr.bf16.mxu0 %v4823_v40  ;;  %v4902_v40 = vld [vmem:[%s5667_s18 + $0xd0] ss:$24 sps:$4 sm:$0xff]  }
 0x108   : > { %2287 = vmatpush1.bf16.msra.mxu1 %v4824_v46  ;;  %v4913_v46 = vld [vmem:[%s5667_s18 + $0x42c] ss:$24 sps:$4 sm:$0xff]  }
 0x109   : > { %2244 = vmatpush1.bf16.msra.mxu0 %v4821_v45  ;;  %2288 = vmatprep.subr.bf16.mxu1 %v4832_v48  ;;  %v4908_v45 = vld [vmem:[%s5667_s18 + $0x100] ss:$24 sps:$4 sm:$0xff]  }
 0x10a   : > { %2245 = vmatprep.subr.bf16.mxu0 %v4829_v47  ;;  %v4916_v47 = vld [vmem:[%s5667_s18 + $0x134] ss:$24 sps:$4 sm:$0xff]   ;;  %v4911_v48 = vld [vmem:[%s5667_s18 + $0x428] ss:$24 sps:$4 sm:$0xff]  }
 0x10c   : > { %2289 = vmatpush1.bf16.msra.mxu1 %v4830_v50  ;;  %v4919_v50 = vld [vmem:[%s5667_s18 + $0x45c] ss:$24 sps:$4 sm:$0xff]  }
 0x10d   : > { %2246 = vmatpush1.bf16.msra.mxu0 %v4827_v49  ;;  %2290 = vmatprep.subr.bf16.mxu1 %v4838_v52  ;;  %v4914_v49 = vld [vmem:[%s5667_s18 + $0x130] ss:$24 sps:$4 sm:$0xff]  }
 0x10e   : > { %2247 = vmatprep.subr.bf16.mxu0 %v4835_v51  ;;  %v4922_v51 = vld [vmem:[%s5667_s18 + $0x164] ss:$24 sps:$4 sm:$0xff]   ;;  %v4917_v52 = vld [vmem:[%s5667_s18 + $0x458] ss:$24 sps:$4 sm:$0xff]  }
 0x110   : > { %2291 = vmatpush1.bf16.msra.mxu1 %v4836_v56  ;;  %v4925_v56 = vld [vmem:[%s5667_s18 + $0x48c] ss:$24 sps:$4 sm:$0xff]  }
 0x111   : > { %2248 = vmatpush1.bf16.msra.mxu0 %v4833_v55  ;;  %2292 = vmatprep.subr.bf16.mxu1 %v4844_v58  ;;  %v4920_v55 = vld [vmem:[%s5667_s18 + $0x160] ss:$24 sps:$4 sm:$0xff]  }
 0x112   : > { %2249 = vmatprep.subr.bf16.mxu0 %v4841_v57  ;;  %v4928_v57 = vld [vmem:[%s5667_s18 + $0x194] ss:$24 sps:$4 sm:$0xff]   ;;  %v4923_v58 = vld [vmem:[%s5667_s18 + $0x488] ss:$24 sps:$4 sm:$0xff]  }
 0x114   : > { %2293 = vmatpush1.bf16.msra.mxu1 %v4842_v60  ;;  %v4931_v60 = vld [vmem:[%s5667_s18 + $0x4bc] ss:$24 sps:$4 sm:$0xff]  }
 0x115   : > { %2250 = vmatpush1.bf16.msra.mxu0 %v4839_v59  ;;  %2294 = vmatprep.subr.bf16.mxu1 %v4850_v62  ;;  %v4926_v59 = vld [vmem:[%s5667_s18 + $0x190] ss:$24 sps:$4 sm:$0xff]  }
 0x116   : > { %2251 = vmatprep.subr.bf16.mxu0 %v4847_v61  ;;  %v4934_v61 = vld [vmem:[%s5667_s18 + $0x1c4] ss:$24 sps:$4 sm:$0xff]   ;;  %v4929_v62 = vld [vmem:[%s5667_s18 + $0x4b8] ss:$24 sps:$4 sm:$0xff]  }
 0x118   : > { %2295 = vmatpush1.bf16.msra.mxu1 %v4848_v0  ;;  %v4937_v0 = vld [vmem:[%s5667_s18 + $0x4ec] ss:$24 sps:$4 sm:$0xff]  }
 0x119   : > { %2252 = vmatpush1.bf16.msra.mxu0 %v4845_v63  ;;  %2296 = vmatprep.subr.bf16.mxu1 %v4856_v2  ;;  %v4932_v63 = vld [vmem:[%s5667_s18 + $0x1c0] ss:$24 sps:$4 sm:$0xff]  }
 0x11a   : > { %2253 = vmatprep.subr.bf16.mxu0 %v4853_v1  ;;  %v4940_v1 = vld [vmem:[%s5667_s18 + $0x1f4] ss:$24 sps:$4 sm:$0xff]   ;;  %v4935_v2 = vld [vmem:[%s5667_s18 + $0x4e8] ss:$24 sps:$4 sm:$0xff]  }
 0x11c   : > { %2297 = vmatpush1.bf16.msra.mxu1 %v4854_v4  ;;  %v4943_v4 = vld [vmem:[%s5667_s18 + $0x51c] ss:$24 sps:$4 sm:$0xff]  }
 0x11d   : > { %2254 = vmatpush1.bf16.msra.mxu0 %v4851_v3  ;;  %2298 = vmatprep.subr.bf16.mxu1 %v4862_v6  ;;  %v4938_v3 = vld [vmem:[%s5667_s18 + $0x1f0] ss:$24 sps:$4 sm:$0xff]  }
 0x11e   : > { %2255 = vmatprep.subr.bf16.mxu0 %v4859_v5  ;;  %v4946_v5 = vld [vmem:[%s5667_s18 + $0x224] ss:$24 sps:$4 sm:$0xff]   ;;  %v4941_v6 = vld [vmem:[%s5667_s18 + $0x518] ss:$24 sps:$4 sm:$0xff]  }
 0x120   : > { %2299 = vmatpush1.bf16.msra.mxu1 %v4860_v8  ;;  %v4949_v8 = vld [vmem:[%s5667_s18 + $0x54c] ss:$24 sps:$4 sm:$0xff]  }
 0x121   : > { %2256 = vmatpush1.bf16.msra.mxu0 %v4857_v7  ;;  %2300 = vmatprep.subr.bf16.mxu1 %v4868_v10  ;;  %v4944_v7 = vld [vmem:[%s5667_s18 + $0x220] ss:$24 sps:$4 sm:$0xff]  }
 0x122   : > { %2257 = vmatprep.subr.bf16.mxu0 %v4865_v9  ;;  %v4952_v9 = vld [vmem:[%s5667_s18 + $0x254] ss:$24 sps:$4 sm:$0xff]   ;;  %v4947_v10 = vld [vmem:[%s5667_s18 + $0x548] ss:$24 sps:$4 sm:$0xff]  }
 0x124   : > { %2301 = vmatpush1.bf16.msra.mxu1 %v4866_v12  ;;  %v4955_v12 = vld [vmem:[%s5667_s18 + $0x57c] ss:$24 sps:$4 sm:$0xff]  }
 0x125   : > { %2258 = vmatpush1.bf16.msra.mxu0 %v4863_v11  ;;  %2302 = vmatprep.subr.bf16.mxu1 %v4874_v16  ;;  %v4950_v11 = vld [vmem:[%s5667_s18 + $0x250] ss:$24 sps:$4 sm:$0xff]  }
 0x126   : > { %2259 = vmatprep.subr.bf16.mxu0 %v4871_v13  ;;  %v4958_v13 = vld [vmem:[%s5667_s18 + $0x284] ss:$24 sps:$4 sm:$0xff]   ;;  %v4953_v16 = vld [vmem:[%s5667_s18 + $0x578] ss:$24 sps:$4 sm:$0xff]  }
 0x128   : > { %2303 = vmatpush1.bf16.msra.mxu1 %v4872_v18  ;;  %v4961_v18 = vld [vmem:[%s5667_s18 + $0x5ac] ss:$24 sps:$4 sm:$0xff]  }
 0x129   : > { %2260 = vmatpush1.bf16.msra.mxu0 %v4869_v17  ;;  %2315 = vmatprep.subr.bf16.mxu1 %v4877_v21  ;;  %v4956_v17 = vld [vmem:[%s5667_s18 + $0x280] ss:$24 sps:$4 sm:$0xff]   ;;  %v4962_v21 = vld [vmem:[%s5667_s18 + $0x2b0] ss:$24 sps:$4 sm:$0xff]  }
 0x12a   : > { %2401 = vmatprep.subr.bf16.mxu0 %v4880_v22  ;;  %v4967_v22 = vld [vmem:[%s5667_s18 + $0x5dc] ss:$24 sps:$4 sm:$0xff]  }
 0x12b   : > { %2305 = vmatmul.mubr.bf16.vlgmr.msra.gmra.mrb[4].mxu1 %v5754_v14 }
 0x12c   : > { %2262 = vmatmul.mubr.bf16.vlgmr.msra.gmra.mrb[0].mxu0 %v5826_v23  ;;  %2316 = vmatpush1.bf16.msra.mxu1 %v4875_v24  ;;  %v4970_v24 = vld [vmem:[%s5667_s18 + $0x2e4] ss:$24 sps:$4 sm:$0xff]  }
 0x12d   : > { %2402 = vmatpush1.bf16.msra.mxu0 %v4878_v25  ;;  %2317 = vmatprep.subr.bf16.mxu1 %v4883_v26  ;;  %v4965_v25 = vld [vmem:[%s5667_s18 + $0x5d8] ss:$24 sps:$4 sm:$0xff]  }
 0x12e   : > { %2403 = vmatprep.subr.bf16.mxu0 %v4886_v27  ;;  %2347 = vmatprep.mubr.bf16.mxu1 %v5731_v54  ;;  %v4968_v26 = vld [vmem:[%s5667_s18 + $0x2e0] ss:$24 sps:$4 sm:$0xff]   ;;  %v4973_v27 = vld [vmem:[%s5667_s18 + $0x60c] ss:$24 sps:$4 sm:$0xff]  }
 0x12f   : > { %2433 = vmatprep.mubr.bf16.mxu0 %v5729_v53  ;;  %v4901_v53 = vld [vmem:[%s5667_s18 + $0x3cc] ss:$24 sps:$4 sm:$0xff]  }
 0x130   : > { %2318 = vmatpush1.bf16.msra.mxu1 %v4881_v28  ;;  %v4976_v28 = vld [vmem:[%s5667_s18 + $0x314] ss:$24 sps:$4 sm:$0xff]  }
 0x131   : > { %2404 = vmatpush1.bf16.msra.mxu0 %v4884_v29  ;;  %2319 = vmatprep.subr.bf16.mxu1 %v4889_v30  ;;  %v4971_v29 = vld [vmem:[%s5667_s18 + $0x608] ss:$24 sps:$4 sm:$0xff]  }
 0x132   : > { %2405 = vmatprep.subr.bf16.mxu0 %v4892_v31  ;;  %v4974_v30 = vld [vmem:[%s5667_s18 + $0x310] ss:$24 sps:$4 sm:$0xff]   ;;  %v4979_v31 = vld [vmem:[%s5667_s18 + $0x63c] ss:$24 sps:$4 sm:$0xff]  }
 0x134   : > { %2320 = vmatpush1.bf16.msra.mxu1 %v4887_v32  ;;  %v4982_v32 = vld [vmem:[%s5667_s18 + $0x344] ss:$24 sps:$4 sm:$0xff]  }
 0x135   : > { %2406 = vmatpush1.bf16.msra.mxu0 %v4890_v33  ;;  %2321 = vmatprep.subr.bf16.mxu1 %v4895_v34  ;;  %v4977_v33 = vld [vmem:[%s5667_s18 + $0x638] ss:$24 sps:$4 sm:$0xff]  }
 0x136   : > { %2407 = vmatprep.subr.bf16.mxu0 %v4898_v35  ;;  %v4980_v34 = vld [vmem:[%s5667_s18 + $0x340] ss:$24 sps:$4 sm:$0xff]   ;;  %v4985_v35 = vld [vmem:[%s5667_s18 + $0x66c] ss:$24 sps:$4 sm:$0xff]  }
 0x138   : > { %2322 = vmatpush1.bf16.msra.mxu1 %v4893_v36  ;;  %v4988_v36 = vld [vmem:[%s5667_s18 + $0x374] ss:$24 sps:$4 sm:$0xff]  }
 0x139   : > { %2408 = vmatpush1.bf16.msra.mxu0 %v4896_v37  ;;  %2323 = vmatprep.subr.bf16.mxu1 %v4901_v53  ;;  %v4986_v37 = vld [vmem:[%s5667_s18 + $0x370] ss:$24 sps:$4 sm:$0xff]   ;;  %v4991_v53 = vld [vmem:[%s5667_s18 + $0x69c] ss:$24 sps:$4 sm:$0xff]  }
 0x13a   : > { %2409 = vmatprep.subr.bf16.mxu0 %v4904_v38  ;;  %v4994_v38 = vld [vmem:[%s5667_s18 + $0x3a4] ss:$24 sps:$4 sm:$0xff]  }
 0x13c   : > { %2324 = vmatpush1.bf16.msra.mxu1 %v4899_v39  ;;  %v4989_v39 = vld [vmem:[%s5667_s18 + $0x698] ss:$24 sps:$4 sm:$0xff]  }
 0x13d   : > { %2410 = vmatpush1.bf16.msra.mxu0 %v4902_v40  ;;  %2325 = vmatprep.subr.bf16.mxu1 %v4907_v41  ;;  %v4992_v40 = vld [vmem:[%s5667_s18 + $0x3a0] ss:$24 sps:$4 sm:$0xff]   ;;  %v5000_v41 = vld [vmem:[%s5667_s18 + $0x3d4] ss:$24 sps:$4 sm:$0xff]  }
 0x13e   : > { %2411 = vmatprep.subr.bf16.mxu0 %v4910_v42  ;;  %v4995_v42 = vld [vmem:[%s5667_s18 + $0x6c8] ss:$24 sps:$4 sm:$0xff]  }
 0x140   : > { %2326 = vmatpush1.bf16.msra.mxu1 %v4905_v43  ;;  %v4998_v43 = vld [vmem:[%s5667_s18 + $0x3d0] ss:$24 sps:$4 sm:$0xff]  }
 0x141   : > { %2412 = vmatpush1.bf16.msra.mxu0 %v4908_v45  ;;  %2327 = vmatprep.subr.bf16.mxu1 %v4913_v46  ;;  %v5003_v45 = vld [vmem:[%s5667_s18 + $0x6fc] ss:$24 sps:$4 sm:$0xff]  }
 0x142   : > { %2413 = vmatprep.subr.bf16.mxu0 %v4916_v47  ;;  %v5006_v46 = vld [vmem:[%s5667_s18 + $0x404] ss:$24 sps:$4 sm:$0xff]   ;;  %v5001_v47 = vld [vmem:[%s5667_s18 + $0x6f8] ss:$24 sps:$4 sm:$0xff]  }
 0x144   : > { %2328 = vmatpush1.bf16.msra.mxu1 %v4911_v48  ;;  %v5004_v48 = vld [vmem:[%s5667_s18 + $0x400] ss:$24 sps:$4 sm:$0xff]  }
 0x145   : > { %2414 = vmatpush1.bf16.msra.mxu0 %v4914_v49  ;;  %2329 = vmatprep.subr.bf16.mxu1 %v4919_v50  ;;  %v5009_v49 = vld [vmem:[%s5667_s18 + $0x72c] ss:$24 sps:$4 sm:$0xff]  }
 0x146   : > { %2415 = vmatprep.subr.bf16.mxu0 %v4922_v51  ;;  %v5012_v50 = vld [vmem:[%s5667_s18 + $0x434] ss:$24 sps:$4 sm:$0xff]   ;;  %v5007_v51 = vld [vmem:[%s5667_s18 + $0x728] ss:$24 sps:$4 sm:$0xff]  }
 0x148   : > { %2330 = vmatpush1.bf16.msra.mxu1 %v4917_v52  ;;  %v5010_v52 = vld [vmem:[%s5667_s18 + $0x430] ss:$24 sps:$4 sm:$0xff]  }
 0x149   : > { %2416 = vmatpush1.bf16.msra.mxu0 %v4920_v55  ;;  %2331 = vmatprep.subr.bf16.mxu1 %v4925_v56  ;;  %v5015_v55 = vld [vmem:[%s5667_s18 + $0x75c] ss:$24 sps:$4 sm:$0xff]  }
 0x14a   : > { %2417 = vmatprep.subr.bf16.mxu0 %v4928_v57  ;;  %v5018_v56 = vld [vmem:[%s5667_s18 + $0x464] ss:$24 sps:$4 sm:$0xff]   ;;  %v5013_v57 = vld [vmem:[%s5667_s18 + $0x758] ss:$24 sps:$4 sm:$0xff]  }
 0x14c   : > { %2332 = vmatpush1.bf16.msra.mxu1 %v4923_v58  ;;  %v5016_v58 = vld [vmem:[%s5667_s18 + $0x460] ss:$24 sps:$4 sm:$0xff]  }
 0x14d   : > { %2418 = vmatpush1.bf16.msra.mxu0 %v4926_v59  ;;  %2333 = vmatprep.subr.bf16.mxu1 %v4931_v60  ;;  %v5021_v59 = vld [vmem:[%s5667_s18 + $0x78c] ss:$24 sps:$4 sm:$0xff]  }
 0x14e   : > { %2419 = vmatprep.subr.bf16.mxu0 %v4934_v61  ;;  %v5024_v60 = vld [vmem:[%s5667_s18 + $0x494] ss:$24 sps:$4 sm:$0xff]   ;;  %v5019_v61 = vld [vmem:[%s5667_s18 + $0x788] ss:$24 sps:$4 sm:$0xff]  }
 0x150   : > { %2334 = vmatpush1.bf16.msra.mxu1 %v4929_v62  ;;  %v5022_v62 = vld [vmem:[%s5667_s18 + $0x490] ss:$24 sps:$4 sm:$0xff]  }
 0x151   : > { %2420 = vmatpush1.bf16.msra.mxu0 %v4932_v63  ;;  %2335 = vmatprep.subr.bf16.mxu1 %v4937_v0  ;;  %v5027_v63 = vld [vmem:[%s5667_s18 + $0x7bc] ss:$24 sps:$4 sm:$0xff]  }
 0x152   : > { %2421 = vmatprep.subr.bf16.mxu0 %v4940_v1  ;;  %v5030_v0 = vld [vmem:[%s5667_s18 + $0x4c4] ss:$24 sps:$4 sm:$0xff]   ;;  %v5025_v1 = vld [vmem:[%s5667_s18 + $0x7b8] ss:$24 sps:$4 sm:$0xff]  }
 0x154   : > { %2336 = vmatpush1.bf16.msra.mxu1 %v4935_v2  ;;  %v5028_v2 = vld [vmem:[%s5667_s18 + $0x4c0] ss:$24 sps:$4 sm:$0xff]  }
 0x155   : > { %2422 = vmatpush1.bf16.msra.mxu0 %v4938_v3  ;;  %2337 = vmatprep.subr.bf16.mxu1 %v4943_v4  ;;  %v5033_v3 = vld [vmem:[%s5667_s18 + $0x7ec] ss:$24 sps:$4 sm:$0xff]  }
 0x156   : > { %2423 = vmatprep.subr.bf16.mxu0 %v4946_v5  ;;  %v5036_v4 = vld [vmem:[%s5667_s18 + $0x4f4] ss:$24 sps:$4 sm:$0xff]   ;;  %v5031_v5 = vld [vmem:[%s5667_s18 + $0x7e8] ss:$24 sps:$4 sm:$0xff]  }
 0x158   : > { %2338 = vmatpush1.bf16.msra.mxu1 %v4941_v6  ;;  %v5034_v6 = vld [vmem:[%s5667_s18 + $0x4f0] ss:$24 sps:$4 sm:$0xff]  }
 0x159   : > { %2424 = vmatpush1.bf16.msra.mxu0 %v4944_v7  ;;  %2339 = vmatprep.subr.bf16.mxu1 %v4949_v8  ;;  %v5039_v7 = vld [vmem:[%s5667_s18 + $0x81c] ss:$24 sps:$4 sm:$0xff]  }
 0x15a   : > { %2425 = vmatprep.subr.bf16.mxu0 %v4952_v9  ;;  %v5042_v8 = vld [vmem:[%s5667_s18 + $0x524] ss:$24 sps:$4 sm:$0xff]   ;;  %v5037_v9 = vld [vmem:[%s5667_s18 + $0x818] ss:$24 sps:$4 sm:$0xff]  }
 0x15c   : > { %2340 = vmatpush1.bf16.msra.mxu1 %v4947_v10  ;;  %v5040_v10 = vld [vmem:[%s5667_s18 + $0x520] ss:$24 sps:$4 sm:$0xff]  }
 0x15d   : > { %2426 = vmatpush1.bf16.msra.mxu0 %v4950_v11  ;;  %2341 = vmatprep.subr.bf16.mxu1 %v4955_v12  ;;  %v5045_v11 = vld [vmem:[%s5667_s18 + $0x84c] ss:$24 sps:$4 sm:$0xff]  }
 0x15e   : > { %2427 = vmatprep.subr.bf16.mxu0 %v4958_v13  ;;  %v5048_v12 = vld [vmem:[%s5667_s18 + $0x554] ss:$24 sps:$4 sm:$0xff]   ;;  %v5043_v13 = vld [vmem:[%s5667_s18 + $0x848] ss:$24 sps:$4 sm:$0xff]  }
 0x160   : > { %2342 = vmatpush1.bf16.msra.mxu1 %v4953_v16  ;;  %v5046_v16 = vld [vmem:[%s5667_s18 + $0x550] ss:$24 sps:$4 sm:$0xff]  }
 0x161   : > { %2428 = vmatpush1.bf16.msra.mxu0 %v4956_v17  ;;  %2343 = vmatprep.subr.bf16.mxu1 %v4961_v18  ;;  %v5051_v17 = vld [vmem:[%s5667_s18 + $0x87c] ss:$24 sps:$4 sm:$0xff]  }
 0x162   : > { %2429 = vmatprep.subr.bf16.mxu0 %v4964_v19  ;;  %v5054_v18 = vld [vmem:[%s5667_s18 + $0x584] ss:$24 sps:$4 sm:$0xff]   ;;  %v5049_v19 = vld [vmem:[%s5667_s18 + $0x878] ss:$24 sps:$4 sm:$0xff]  }
 0x164   : > { %2344 = vmatpush1.bf16.msra.mxu1 %v4959_v20  ;;  %v5052_v20 = vld [vmem:[%s5667_s18 + $0x580] ss:$24 sps:$4 sm:$0xff]  }
 0x165   : > { %2430 = vmatpush1.bf16.msra.mxu0 %v4962_v21  ;;  %2345 = vmatprep.subr.bf16.mxu1 %v4967_v22  ;;  %v5057_v21 = vld [vmem:[%s5667_s18 + $0x8ac] ss:$24 sps:$4 sm:$0xff]  }
 0x166   : > { %2431 = vmatprep.subr.bf16.mxu0 %v4970_v24  ;;  %v5060_v22 = vld [vmem:[%s5667_s18 + $0x5b4] ss:$24 sps:$4 sm:$0xff]   ;;  %v5055_v24 = vld [vmem:[%s5667_s18 + $0x8a8] ss:$24 sps:$4 sm:$0xff]  }
 0x168   : > { %2346 = vmatpush1.bf16.msra.mxu1 %v4965_v25  ;;  %v5058_v25 = vld [vmem:[%s5667_s18 + $0x5b0] ss:$24 sps:$4 sm:$0xff]  }
 0x169   : > { %2432 = vmatpush1.bf16.msra.mxu0 %v4968_v26  ;;  %2358 = vmatprep.subr.bf16.mxu1 %v4973_v27  ;;  %v5063_v26 = vld [vmem:[%s5667_s18 + $0x8dc] ss:$24 sps:$4 sm:$0xff]  }
 0x16a   : > { %2444 = vmatprep.subr.bf16.mxu0 %v4976_v28  ;;  %v5066_v27 = vld [vmem:[%s5667_s18 + $0x5e4] ss:$24 sps:$4 sm:$0xff]   ;;  %v5061_v28 = vld [vmem:[%s5667_s18 + $0x8d8] ss:$24 sps:$4 sm:$0xff]  }
 0x16b   : > { %2348 = vmatmul.mubr.bf16.vlgmr.msra.gmra.mrb[4].mxu1 %v5756_v15 }
 0x16c   : > { %2434 = vmatmul.mubr.bf16.vlgmr.msra.gmra.mrb[4].mxu0 %v5754_v14  ;;  %2359 = vmatpush1.bf16.msra.mxu1 %v4971_v29  ;;  %v4983_v14 = vld [vmem:[%s5667_s18 + $0x668] ss:$24 sps:$4 sm:$0xff]  }
 0x16d   : > { %2445 = vmatpush1.bf16.msra.mxu0 %v4974_v30  ;;  %2360 = vmatprep.subr.bf16.mxu1 %v4979_v31  ;;  %v5064_v29 = vld [vmem:[%s5667_s18 + $0x5e0] ss:$24 sps:$4 sm:$0xff]   ;;  %v5069_v30 = vld [vmem:[%s5667_s18 + $0x614] ss:$24 sps:$4 sm:$0xff]   ;;  %v5067_v31 = vld [vmem:[%s5667_s18 + $0x610] ss:$24 sps:$4 sm:$0xff]  }
 0x16e   : > { %2446 = vmatprep.subr.bf16.mxu0 %v4982_v32  ;;  %2390 = vmatprep.mubr.bf16.mxu1 %v5787_v44  ;;  %v5072_v32 = vld [vmem:[%s5667_s18 + $0x644] ss:$24 sps:$4 sm:$0xff]  }
 0x16f   : > { %2476 = vmatprep.mubr.bf16.mxu0 %v5731_v54  ;;  %v4997_v54 = vld [vmem:[%s5667_s18 + $0x6cc] ss:$24 sps:$4 sm:$0xff]  }
 0x170   : > { %2361 = vmatpush1.bf16.msra.mxu1 %v4977_v33  ;;  %v5070_v33 = vld [vmem:[%s5667_s18 + $0x640] ss:$24 sps:$4 sm:$0xff]  }
 0x171   : > { %2447 = vmatpush1.bf16.msra.mxu0 %v4980_v34  ;;  %2362 = vmatprep.subr.bf16.mxu1 %v4985_v35  ;;  %v5075_v34 = vld [vmem:[%s5667_s18 + $0x674] ss:$24 sps:$4 sm:$0xff]   ;;  %v5073_v35 = vld [vmem:[%s5667_s18 + $0x670] ss:$24 sps:$4 sm:$0xff]  }
 0x172   : > { %2448 = vmatprep.subr.bf16.mxu0 %v4988_v36  ;;  %v5078_v36 = vld [vmem:[%s5667_s18 + $0x6a4] ss:$24 sps:$4 sm:$0xff]  }
 0x174   : > { %2363 = vmatpush1.bf16.msra.mxu1 %v4983_v14  ;;  %v5076_v14 = vld [vmem:[%s5667_s18 + $0x6a0] ss:$24 sps:$4 sm:$0xff]  }
 0x175   : > { %2449 = vmatpush1.bf16.msra.mxu0 %v4986_v37  ;;  %2364 = vmatprep.subr.bf16.mxu1 %v4991_v53  ;;  %v5081_v37 = vld [vmem:[%s5667_s18 + $0x6d4] ss:$24 sps:$4 sm:$0xff]   ;;  %v5084_v53 = vld [vmem:[%s5667_s18 + $0x704] ss:$24 sps:$4 sm:$0xff]  }
 0x176   : > { %2450 = vmatprep.subr.bf16.mxu0 %v4994_v38  ;;  %v5087_v38 = vld [vmem:[%s5667_s18 + $0x734] ss:$24 sps:$4 sm:$0xff]  }
 0x178   : > { %2365 = vmatpush1.bf16.msra.mxu1 %v4989_v39 }
 0x179   : > { %2451 = vmatpush1.bf16.msra.mxu0 %v4992_v40  ;;  %2366 = vmatprep.subr.bf16.mxu1 %v4997_v54  ;;  %v5085_v54 = vld [vmem:[%s5667_s18 + $0x730] ss:$24 sps:$4 sm:$0xff]  }
 0x17a   : > { %2452 = vmatprep.subr.bf16.mxu0 %v5000_v41 }
 0x17c   : > { %2367 = vmatpush1.bf16.msra.mxu1 %v4995_v42  ;;  %v5090_v42 = vld [vmem:[%s5667_s18 + $0x764] ss:$24 sps:$4 sm:$0xff]  }
 0x17d   : > { %2453 = vmatpush1.bf16.msra.mxu0 %v4998_v43  ;;  %2368 = vmatprep.subr.bf16.mxu1 %v5003_v45  ;;  %v5088_v45 = vld [vmem:[%s5667_s18 + $0x760] ss:$24 sps:$4 sm:$0xff]  }
 0x17e   : > { %2454 = vmatprep.subr.bf16.mxu0 %v5006_v46  ;;  %v5093_v46 = vld [vmem:[%s5667_s18 + $0x794] ss:$24 sps:$4 sm:$0xff]  }
 0x180   : > { %2369 = vmatpush1.bf16.msra.mxu1 %v5001_v47  ;;  %v5091_v47 = vld [vmem:[%s5667_s18 + $0x790] ss:$24 sps:$4 sm:$0xff]  }
 0x181   : > { %2455 = vmatpush1.bf16.msra.mxu0 %v5004_v48  ;;  %2370 = vmatprep.subr.bf16.mxu1 %v5009_v49  ;;  %v5096_v48 = vld [vmem:[%s5667_s18 + $0x7c4] ss:$24 sps:$4 sm:$0xff]   ;;  %v5094_v49 = vld [vmem:[%s5667_s18 + $0x7c0] ss:$24 sps:$4 sm:$0xff]  }
 0x182   : > { %2456 = vmatprep.subr.bf16.mxu0 %v5012_v50  ;;  %v5099_v50 = vld [vmem:[%s5667_s18 + $0x7f4] ss:$24 sps:$4 sm:$0xff]  }
 0x184   : > { %2371 = vmatpush1.bf16.msra.mxu1 %v5007_v51  ;;  %v5097_v51 = vld [vmem:[%s5667_s18 + $0x7f0] ss:$24 sps:$4 sm:$0xff]  }
 0x185   : > { %2457 = vmatpush1.bf16.msra.mxu0 %v5010_v52  ;;  %2372 = vmatprep.subr.bf16.mxu1 %v5015_v55  ;;  %v5102_v52 = vld [vmem:[%s5667_s18 + $0x824] ss:$24 sps:$4 sm:$0xff]   ;;  %v5100_v55 = vld [vmem:[%s5667_s18 + $0x820] ss:$24 sps:$4 sm:$0xff]  }
 0x186   : > { %2458 = vmatprep.subr.bf16.mxu0 %v5018_v56  ;;  %v5105_v56 = vld [vmem:[%s5667_s18 + $0x854] ss:$24 sps:$4 sm:$0xff]  }
 0x188   : > { %2373 = vmatpush1.bf16.msra.mxu1 %v5013_v57  ;;  %v5103_v57 = vld [vmem:[%s5667_s18 + $0x850] ss:$24 sps:$4 sm:$0xff]  }
 0x189   : > { %2459 = vmatpush1.bf16.msra.mxu0 %v5016_v58  ;;  %2374 = vmatprep.subr.bf16.mxu1 %v5021_v59  ;;  %v5108_v58 = vld [vmem:[%s5667_s18 + $0x884] ss:$24 sps:$4 sm:$0xff]   ;;  %v5106_v59 = vld [vmem:[%s5667_s18 + $0x880] ss:$24 sps:$4 sm:$0xff]  }
 0x18a   : > { %2460 = vmatprep.subr.bf16.mxu0 %v5024_v60  ;;  %v5111_v60 = vld [vmem:[%s5667_s18 + $0x8b4] ss:$24 sps:$4 sm:$0xff]  }
 0x18c   : > { %2375 = vmatpush1.bf16.msra.mxu1 %v5019_v61  ;;  %v5109_v61 = vld [vmem:[%s5667_s18 + $0x8b0] ss:$24 sps:$4 sm:$0xff]  }
 0x18d   : > { %2461 = vmatpush1.bf16.msra.mxu0 %v5022_v62  ;;  %2376 = vmatprep.subr.bf16.mxu1 %v5027_v63  ;;  %v5114_v62 = vld [vmem:[%s5667_s18 + $0x8e4] ss:$24 sps:$4 sm:$0xff]   ;;  %v5112_v63 = vld [vmem:[%s5667_s18 + $0x8e0] ss:$24 sps:$4 sm:$0xff]  }
 0x18e   : > { %2462 = vmatprep.subr.bf16.mxu0 %v5030_v0  ;;  %v673_v0 = vlaneseq }
 0x190   : > { %2377 = vmatpush1.bf16.msra.mxu1 %v5025_v1  ;;  %v674_v1 = vshrl.u32 %v673_v0, 7 }
 0x191   : > { %2463 = vmatpush1.bf16.msra.mxu0 %v5028_v2  ;;  %2378 = vmatprep.subr.bf16.mxu1 %v5033_v3  ;;  %v671_v3 = vld [vmem:[%s323_s20] sm:$0x3f] }
 0x192   : > { %2464 = vmatprep.subr.bf16.mxu0 %v5036_v4  ;;  %v5998_v2 = vsub.s32 0, %v674_v1  ;;  %v679_v4 = vsub.s32 1, %v674_v1 }
 0x194   : > { %2379 = vmatpush1.bf16.msra.mxu1 %v5031_v5  ;;  %v676_v5 = vrot.slane %v671_v3, %v5998_v2 }
 0x195   : > { %2465 = vmatpush1.bf16.msra.mxu0 %v5034_v6  ;;  %2380 = vmatprep.subr.bf16.mxu1 %v5039_v7  ;;  %v680_v6 = vrot.slane %v671_v3, %v679_v4 }
 0x196   : > { %2466 = vmatprep.subr.bf16.mxu0 %v5042_v8 }
 0x198   : > { %2381 = vmatpush1.bf16.msra.mxu1 %v5037_v9 }
 0x199   : > { %2467 = vmatpush1.bf16.msra.mxu0 %v5040_v10  ;;  %2382 = vmatprep.subr.bf16.mxu1 %v5045_v11 }
 0x19a   : > { %2468 = vmatprep.subr.bf16.mxu0 %v5048_v12 }
 0x19c   : > { %2383 = vmatpush1.bf16.msra.mxu1 %v5043_v13 }
 0x19d   : > { %2469 = vmatpush1.bf16.msra.mxu0 %v5046_v16  ;;  %2384 = vmatprep.subr.bf16.mxu1 %v5051_v17 }
 0x19e   : > { %2470 = vmatprep.subr.bf16.mxu0 %v5054_v18 }
 0x1a0   : > { %2385 = vmatpush1.bf16.msra.mxu1 %v5049_v19 }
 0x1a1   : > { %2471 = vmatpush1.bf16.msra.mxu0 %v5052_v20  ;;  %2386 = vmatprep.subr.bf16.mxu1 %v5057_v21  ;;  %v683_v20 = vsub.s32 2, %v674_v1  ;;  %v687_v21 = vsub.s32 3, %v674_v1 }
 0x1a2   : > { %2472 = vmatprep.subr.bf16.mxu0 %v5060_v22 }
 0x1a3   : > { %v684_v22 = vrot.slane %v671_v3, %v683_v20 }
 0x1a4   : > { %2387 = vmatpush1.bf16.msra.mxu1 %v5055_v24  ;;  %v688_v24 = vrot.slane %v671_v3, %v687_v21 }
 0x1a5   : > { %2473 = vmatpush1.bf16.msra.mxu0 %v5058_v25  ;;  %2388 = vmatprep.subr.bf16.mxu1 %v5063_v26 }
 0x1a6   : > { %2474 = vmatprep.subr.bf16.mxu0 %v5066_v27 }
 0x1a8   : > { %2389 = vmatpush1.bf16.msra.mxu1 %v5061_v28 }
 0x1a9   : > { %2475 = vmatpush1.bf16.msra.mxu0 %v5064_v29 }
 0x1aa   : > { %2487 = vmatprep.subr.bf16.mxu0 %v5069_v30 }
 0x1ab   : > { %2391 = vmatmul.mubr.bf16.vlgmr.msra.gmra.mrb[4].mxu1 %v5826_v23 }
 0x1ac   : > { %2477 = vmatmul.mubr.bf16.vlgmr.msra.gmra.mrb[4].mxu0 %v5756_v15  ;;  %v5079_v15 = vld [vmem:[%s5667_s18 + $0x6d0] ss:$24 sps:$4 sm:$0xff]  }
 0x1ad   : > { %2488 = vmatpush1.bf16.msra.mxu0 %v5067_v31  ;;  %2519 = vmatprep.mubr.bf16.mxu0 %v5787_v44  ;;  %v5082_v44 = vld [vmem:[%s5667_s18 + $0x700] ss:$24 sps:$4 sm:$0xff]  }
 0x1ae   : > { %2489 = vmatprep.subr.bf16.mxu0 %v5072_v32 }
 0x1b1   : > { %2490 = vmatpush1.bf16.msra.mxu0 %v5070_v33  ;;  %v691_v33 = vsub.s32 4, %v674_v1 }
 0x1b2   : > { %2491 = vmatprep.subr.bf16.mxu0 %v5075_v34  ;;  %v695_v34 = vsub.s32 5, %v674_v1 }
 0x1b5   : > { %2492 = vmatpush1.bf16.msra.mxu0 %v5073_v35  ;;  %v692_v35 = vrot.slane %v671_v3, %v691_v33 }
 0x1b6   : > { %2493 = vmatprep.subr.bf16.mxu0 %v5078_v36  ;;  %v696_v36 = vrot.slane %v671_v3, %v695_v34 }
 0x1b9   : > { %2494 = vmatpush1.bf16.msra.mxu0 %v5076_v14 }
 0x1ba   : > { %2495 = vmatprep.subr.bf16.mxu0 %v5081_v37 }
 0x1bd   : > { %2496 = vmatpush1.bf16.msra.mxu0 %v5079_v15 }
 0x1be   : > { %2497 = vmatprep.subr.bf16.mxu0 %v5084_v53  ;;  %v2177_v39 = vpop.f32.mrb[0].mxu1 }
 0x1bf   : > { %v2179_v40 = vpop.f32.mrb[1].mxu1  ;;  %v2178_v7 = vadd.f32 %v2177_v39, %v676_v5 }
 0x1c0   : > { %v2181_v41 = vpop.f32.mrb[2].mxu1  ;;  %v2180_v8 = vadd.f32 %v2179_v40, %v680_v6 }
 0x1c1   : > { %2498 = vmatpush1.bf16.msra.mxu0 %v5082_v44  ;;  %v2183_v43 = vpop.f32.mrb[3].mxu1  ;;  %v2182_v9 = vadd.f32 %v2181_v41, %v676_v5 }
 0x1c2   : > { %2499 = vmatprep.subr.bf16.mxu0 %v5087_v38  ;;  %v2184_v11 = vadd.f32 %v2183_v43, %v680_v6 }
 0x1c5   : > { %2500 = vmatpush1.bf16.msra.mxu0 %v5085_v54 }
 0x1c6   : > { %2501 = vmatprep.subr.bf16.mxu0 %v5090_v42 }
 0x1c9   : > { %2502 = vmatpush1.bf16.msra.mxu0 %v5088_v45 }
 0x1ca   : > { %2503 = vmatprep.subr.bf16.mxu0 %v5093_v46 }
 0x1cd   : > { %2504 = vmatpush1.bf16.msra.mxu0 %v5091_v47 }
 0x1ce   : > { %2505 = vmatprep.subr.bf16.mxu0 %v5096_v48 }
 0x1d1   : > { %2506 = vmatpush1.bf16.msra.mxu0 %v5094_v49 }
 0x1d2   : > { %2507 = vmatprep.subr.bf16.mxu0 %v5099_v50 }
 0x1d5   : > { %2508 = vmatpush1.bf16.msra.mxu0 %v5097_v51 }
 0x1d6   : > { %2509 = vmatprep.subr.bf16.mxu0 %v5102_v52 }
 0x1d9   : > { %2510 = vmatpush1.bf16.msra.mxu0 %v5100_v55 }
 0x1da   : > { %2511 = vmatprep.subr.bf16.mxu0 %v5105_v56 }
 0x1dd   : > { %2512 = vmatpush1.bf16.msra.mxu0 %v5103_v57 }
 0x1de   : > { %2513 = vmatprep.subr.bf16.mxu0 %v5108_v58 }
 0x1e1   : > { %2514 = vmatpush1.bf16.msra.mxu0 %v5106_v59 }
 0x1e2   : > { %2515 = vmatprep.subr.bf16.mxu0 %v5111_v60 }
 0x1e5   : > { %2516 = vmatpush1.bf16.msra.mxu0 %v5109_v61 }
 0x1e6   : > { %2517 = vmatprep.subr.bf16.mxu0 %v5114_v62 }
 0x1e9   : > { %2518 = vmatpush1.bf16.msra.mxu0 %v5112_v63 }
 0x1ec   : > { %2520 = vmatmul.mubr.bf16.vlgmr.msra.gmra.mrb[4].mxu0 %v5826_v23 }
 0x1ff   : > { %v2263_v10 = vpop.f32.mrb[0].mxu0 }
 0x200   : > { %v6003_v12 = vadd.f32 %v2263_v10, %v2178_v7  ;;  %v2265_v13 = vpop.f32.mrb[1].mxu0 }
 0x201   : > { %v6005_v16 = vadd.f32 %v2265_v13, %v2180_v8  ;;  %v2267_v23 = vpop.f32.mrb[2].mxu0 }
 0x202   : > { %v6007_v17 = vadd.f32 %v2267_v23, %v2182_v9  ;;  %v2269_v18 = vpop.f32.mrb[3].mxu0  ;;  %2534 = vst [vmem:[#allocation2] sm:$0xff] (!%p6631_p3), %v6003_v12 }
 0x203   : > { %v6009_v19 = vadd.f32 %v2269_v18, %v2184_v11  ;;  %2535 = vst [vmem:[#allocation2 + $0x8] sm:$0xff] (!%p6631_p3), %v6005_v16 }
 0x204   : > { %2540 = vst [vmem:[#allocation2 + $0x30] sm:$0xff] (!%p6631_p3), %v6007_v17 }
 0x205   : > { %2541 = vst [vmem:[#allocation2 + $0x38] sm:$0xff] (!%p6631_p3), %v6009_v19 }
 0x27e   : > { %v2392_v25 = vpop.f32.mrb[4].mxu1 }
 0x27f   : > { %v6011_v26 = vadd.f32 %v2392_v25, %v684_v22  ;;  %v2394_v27 = vpop.f32.mrb[5].mxu1 }
 0x280   : > { %v6013_v28 = vadd.f32 %v2394_v27, %v688_v24  ;;  %v2396_v29 = vpop.f32.mrb[6].mxu1 }
 0x281   : > { %v6015_v30 = vadd.f32 %v2396_v29, %v684_v22  ;;  %v2398_v31 = vpop.f32.mrb[7].mxu1  ;;  %2536 = vst [vmem:[#allocation2 + $0x10] sm:$0xff] (!%p6631_p3), %v6011_v26 }
 0x282   : > { %v6017_v32 = vadd.f32 %v2398_v31, %v688_v24  ;;  %2537 = vst [vmem:[#allocation2 + $0x18] sm:$0xff] (!%p6631_p3), %v6013_v28 }
 0x283   : > { %2542 = vst [vmem:[#allocation2 + $0x40] sm:$0xff] (!%p6631_p3), %v6015_v30 }
 0x284   : > { %2543 = vst [vmem:[#allocation2 + $0x48] sm:$0xff] (!%p6631_p3), %v6017_v32 }
 0x2bd   : > { %2533 = sbr.rel (%p6631_p3) target bundleno = 710 (0x2c6), region = 72 }
 0x2bf   : > { %v2521_v14 = vpop.f32.mrb[4].mxu0 }
 0x2c0   : > { %v6019_v37 = vadd.f32 %v2521_v14, %v692_v35  ;;  %v2523_v15 = vpop.f32.mrb[5].mxu0 }
 0x2c1   : > { %v6021_v53 = vadd.f32 %v2523_v15, %v696_v36  ;;  %v2525_v44 = vpop.f32.mrb[6].mxu0 }
 0x2c2   : > { %v6023_v38 = vadd.f32 %v2525_v44, %v692_v35  ;;  %v2527_v39 = vpop.f32.mrb[7].mxu0  ;;  %2538 = vst [vmem:[#allocation2 + $0x20] sm:$0xff] (!%p6631_p3), %v6019_v37 }
 0x2c3   : > { %v6025_v40 = vadd.f32 %v2527_v39, %v696_v36  ;;  %2539 = vst [vmem:[#allocation2 + $0x28] sm:$0xff] (!%p6631_p3), %v6021_v53 }
 0x2c4   : > { %2544 = vst [vmem:[#allocation2 + $0x50] sm:$0xff] %v6023_v38 }
 0x2c5   : > { %2545 = vst [vmem:[#allocation2 + $0x58] sm:$0xff] %v6025_v40 }
 0x2c6 PF: > { %p4219_p4 = scmp.ne.s32.totalorder %s5469_s28, 1 }
 0x2c7   : > { %2551 = vst [vmem:[#allocation2 + $0x60] sm:$0xff] (!%p4219_p4), %v6003_v12  ;;  %2552 = vst [vmem:[#allocation2 + $0x68] sm:$0xff] (!%p4219_p4), %v6005_v16 }
 0x2c8   : > { %2549 = sbr.rel (%p4219_p4) target bundleno = 719 (0x2cf), region = 76  ;;  %2553 = vst [vmem:[#allocation2 + $0x70] sm:$0xff] (!%p4219_p4), %v6011_v26  ;;  %2554 = vst [vmem:[#allocation2 + $0x78] sm:$0xff] (!%p4219_p4), %v6013_v28 }
 0x2c9   : > { %2555 = vst [vmem:[#allocation2 + $0x80] sm:$0xff] (!%p4219_p4), %v6019_v37  ;;  %2556 = vst [vmem:[#allocation2 + $0x88] sm:$0xff] (!%p4219_p4), %v6021_v53 }
 0x2ca   : > { %2557 = vst [vmem:[#allocation2 + $0x90] sm:$0xff] (!%p4219_p4), %v6007_v17  ;;  %2558 = vst [vmem:[#allocation2 + $0x98] sm:$0xff] (!%p4219_p4), %v6009_v19 }
 0x2cb   : > { %2559 = vst [vmem:[#allocation2 + $0xa0] sm:$0xff] (!%p4219_p4), %v6015_v30  ;;  %2560 = vst [vmem:[#allocation2 + $0xa8] sm:$0xff] (!%p4219_p4), %v6017_v32 }
 0x2cc   : > { %2561 = vst [vmem:[#allocation2 + $0xb0] sm:$0xff] (!%p4219_p4), %v6023_v38  ;;  %2562 = vst [vmem:[#allocation2 + $0xb8] sm:$0xff] (!%p4219_p4), %v6025_v40 }
 0x2cf PF: > { %p4220_p12 = scmp.ne.s32.totalorder %s5469_s28, 2 }
 0x2d0   : > { %v5115_v54 = vld [vmem:[%s6590_s3 + $0x40] sm:$0xff] (!%p4220_p12)   ;;  %v5119_v45 = vld [vmem:[%s6590_s3 + $0x48] sm:$0xff] (!%p4220_p12)   ;;  %v5123_v49 = vld [vmem:[%s6590_s3 + $0x50] sm:$0xff] (!%p4220_p12)   ;;  %vm3238_vm0 = vcmask (!%p4220_p12), 1045504   ;;  %vm3165_vm1 = vcmask (!%p4220_p12), 97280   ;;  %vm3585_vm2 = vcmask (!%p4220_p12), 1041409  }
 0x2d1   : > { %2566 = sbr.rel (%p4220_p12) target bundleno = 1542 (0x606), region = 80  ;;  %v5116_v41 = vld [vmem:[%s6590_s3 + $0xc0] sm:$0xff] (!%p4220_p12)   ;;  %4288 = vmatprep.subr.bf16.mxu0 (!%p4220_p12), %v5115_v54  ;;  %v5120_v46 = vld [vmem:[%s6590_s3 + $0xc8] sm:$0xff] (!%p4220_p12)   ;;  %v5124_v50 = vld [vmem:[%s6590_s3 + $0xd0] sm:$0xff] (!%p4220_p12)   ;;  %vm3808_vm3 = vcmask (!%p4220_p12), 74752  }
 0x2d2   : > { %v5117_v42 = vld [vmem:[%s6590_s3] sm:$0xff] (!%p4220_p12)   ;;  %4310 = vmatprep.subr.bf16.mxu1 (!%p4220_p12), %v5116_v41  ;;  %v5121_v47 = vld [vmem:[%s6590_s3 + $0x8] sm:$0xff] (!%p4220_p12)   ;;  %v5125_v51 = vld [vmem:[%s6590_s3 + $0x10] sm:$0xff] (!%p4220_p12)  }
 0x2d3   : > { %v5118_v43 = vld [vmem:[%s6590_s3 + $0x80] sm:$0xff] (!%p4220_p12)   ;;  %4289 = vmatpush3.bf16.msra.mxu0 (!%p4220_p12), %v5117_v42  ;;  %v5122_v48 = vld [vmem:[%s6590_s3 + $0x88] sm:$0xff] (!%p4220_p12)   ;;  %v5126_v52 = vld [vmem:[%s6590_s3 + $0x90] sm:$0xff] (!%p4220_p12)  }
 0x2d4   : > { %4311 = vmatpush3.bf16.msra.mxu1 (!%p4220_p12), %v5118_v43  ;;  %4290 = vmatprep.subr.bf16.mxu0 (!%p4220_p12), %v5119_v45  ;;  %v5127_v55 = vld [vmem:[%s6590_s3 + $0x58] sm:$0xff] (!%p4220_p12)   ;;  %v5131_v59 = vld [vmem:[%s6590_s3 + $0x60] sm:$0xff] (!%p4220_p12)   ;;  %v5135_v63 = vld [vmem:[%s6590_s3 + $0x68] sm:$0xff] (!%p4220_p12)  }
 0x2d5   : > { %4312 = vmatprep.subr.bf16.mxu1 (!%p4220_p12), %v5120_v46  ;;  %v5128_v56 = vld [vmem:[%s6590_s3 + $0xd8] sm:$0xff] (!%p4220_p12)   ;;  %v5132_v60 = vld [vmem:[%s6590_s3 + $0xe0] sm:$0xff] (!%p4220_p12)   ;;  %v5136_v0 = vld [vmem:[%s6590_s3 + $0xe8] sm:$0xff] (!%p4220_p12)  }
 0x2d6   : > { %v5129_v57 = vld [vmem:[%s6590_s3 + $0x18] sm:$0xff] (!%p4220_p12)   ;;  %v5133_v61 = vld [vmem:[%s6590_s3 + $0x20] sm:$0xff] (!%p4220_p12)   ;;  %v5137_v1 = vld [vmem:[%s6590_s3 + $0x28] sm:$0xff] (!%p4220_p12)  }
 0x2d7   : > { %4291 = vmatpush3.bf16.msra.mxu0 (!%p4220_p12), %v5121_v47  ;;  %v5130_v58 = vld [vmem:[%s6590_s3 + $0x98] sm:$0xff] (!%p4220_p12)   ;;  %v5134_v62 = vld [vmem:[%s6590_s3 + $0xa0] sm:$0xff] (!%p4220_p12)   ;;  %v5138_v3 = vld [vmem:[%s6590_s3 + $0xa8] sm:$0xff] (!%p4220_p12)  }
 0x2d8   : > { %4313 = vmatpush3.bf16.msra.mxu1 %v5122_v48  ;;  %4292 = vmatprep.subr.bf16.mxu0 %v5123_v49  ;;  %v5139_v4 = vld [vmem:[%s6590_s3 + $0x70] sm:$0xff]   ;;  %v5143_v8 = vld [vmem:[%s6590_s3 + $0x78] sm:$0xff]   ;;  %v2568_v13 = vld [vmem:[#allocation2 + $0x8] sm:$0xff] }
 0x2d9   : > { %4314 = vmatprep.subr.bf16.mxu1 %v5124_v50  ;;  %v5140_v5 = vld [vmem:[%s6590_s3 + $0xf0] sm:$0xff]   ;;  %v5144_v9 = vld [vmem:[%s6590_s3 + $0xf8] sm:$0xff]   ;;  %v2581_v18 = vld [vmem:[#allocation2 + $0x68] sm:$0xff]  ;;  %v2599_v21 = vrot.slane %v2568_v13, %v5998_v2 }
 0x2da   : > { %v5141_v6 = vld [vmem:[%s6590_s3 + $0x30] sm:$0xff]   ;;  %v5145_v10 = vld [vmem:[%s6590_s3 + $0x38] sm:$0xff]   ;;  %v2576_v25 = vld [vmem:[#allocation2 + $0x48] sm:$0xff] }
 0x2db   : > { %4293 = vmatpush3.bf16.msra.mxu0 %v5125_v51  ;;  %v5142_v7 = vld [vmem:[%s6590_s3 + $0xb0] sm:$0xff]   ;;  %v5146_v11 = vld [vmem:[%s6590_s3 + $0xb8] sm:$0xff]   ;;  %v2589_v29 = vld [vmem:[#allocation2 + $0xa8] sm:$0xff]  ;;  %v2631_v33 = vrot.slane %v2576_v25, %v5998_v2  ;;  %v2641_v35 = vmul.f32 %v2599_v21, %v2581_v18 }
 0x2dc   : > { %4315 = vmatpush3.bf16.msra.mxu1 %v5126_v52  ;;  %4294 = vmatprep.subr.bf16.mxu0 %v5127_v55  ;;  %v2574_v23 = vld [vmem:[#allocation2 + $0x38] sm:$0xff]  ;;  %v2567_v34 = vld [vmem:[#allocation2] sm:$0xff]  ;;  %v2573_v14 = vld [vmem:[#allocation2 + $0x30] sm:$0xff] }
 0x2dd   : > { %4316 = vmatprep.subr.bf16.mxu1 %v5128_v56  ;;  %v2587_v20 = vld [vmem:[#allocation2 + $0x98] sm:$0xff]  ;;  %v2623_v22 = vrot.slane %v2574_v23, %v5998_v2  ;;  %v2580_v15 = vld [vmem:[#allocation2 + $0x60] sm:$0xff]  ;;  %v2586_v44 = vld [vmem:[#allocation2 + $0x90] sm:$0xff]  ;;  %v2595_v39 = vrot.slane %v2567_v34, %v5998_v2  ;;  %v2649_v41 = vmul.f32 %v2631_v33, %v2589_v29  ;;  %v2619_v42 = vrot.slane %v2573_v14, %v5998_v2 }
 0x2de   : > { %v2570_v24 = vld [vmem:[#allocation2 + $0x18] sm:$0xff]  ;;  %v2569_v43 = vld [vmem:[#allocation2 + $0x10] sm:$0xff]  ;;  %v2575_v45 = vld [vmem:[#allocation2 + $0x40] sm:$0xff] }
 0x2df   : > { %4295 = vmatpush3.bf16.msra.mxu0 %v5129_v57  ;;  %v2583_v27 = vld [vmem:[#allocation2 + $0x78] sm:$0xff]  ;;  %v2607_v31 = vrot.slane %v2570_v24, %v5998_v2  ;;  %v2647_v36 = vmul.f32 %v2623_v22, %v2587_v20  ;;  %v2582_v46 = vld [vmem:[#allocation2 + $0x70] sm:$0xff]  ;;  %v2640_v48 = vmul.f32 %v2595_v39, %v2580_v15  ;;  %v2588_v49 = vld [vmem:[#allocation2 + $0xa0] sm:$0xff]  ;;  %v2603_v50 = vrot.slane %v2569_v43, %v5998_v2 }
 0x2e0   : > { %4317 = vmatpush3.bf16.msra.mxu1 %v5130_v58  ;;  %4296 = vmatprep.subr.bf16.mxu0 %v5131_v59  ;;  %v2627_v51 = vrot.slane %v2575_v45, %v5998_v2  ;;  %v2646_v55 = vmul.f32 %v2619_v42, %v2586_v44  ;;  %v5147_v56 = vld [vmem:[%s6590_s3 + $0x140] sm:$0xff]   ;;  %v5157_v23 = vld [vmem:[%s6590_s3 + $0x168] sm:$0xff]   ;;  %v2577_v25 = vld [vmem:[#allocation2 + $0x50] sm:$0xff]  ;;  %v5408_v42 = vmov 0  }
 0x2e1   : > { %4318 = vmatprep.subr.bf16.mxu1 %v5132_v60  ;;  %v2643_v54 = vmul.f32 %v2607_v31, %v2583_v27  ;;  %v2653_v47 = vpack.c.bf16 %v2647_v36, %v2641_v35  ;;  %v2642_v57 = vmul.f32 %v2603_v50, %v2582_v46  ;;  %v5148_v59 = vld [vmem:[%s6590_s3 + $0x100] sm:$0xff]   ;;  %v5158_v22 = vld [vmem:[%s6590_s3 + $0x128] sm:$0xff]   ;;  %v5159_v27 = vld [vmem:[%s6590_s3 + $0x170] sm:$0xff]   ;;  %v2635_v31 = vrot.slane %v2577_v25, %v5998_v2 }
 0x2e2   : > { %v2648_v58 = vmul.f32 %v2627_v51, %v2588_v49  ;;  %v2652_v60 = vpack.c.bf16 %v2646_v55, %v2640_v48  ;;  %v5156_v13 = vld [vmem:[%s6590_s3 + $0x120] sm:$0xff]   ;;  %v5160_v33 = vld [vmem:[%s6590_s3 + $0x130] sm:$0xff]   ;;  %v5161_v36 = vld [vmem:[%s6590_s3 + $0x178] sm:$0xff]  }
 0x2e3   : > { %4297 = vmatpush3.bf16.msra.mxu0 %v5133_v61  ;;  %v2655_v52 = vpack.c.bf16 %v2649_v41, %v2643_v54  ;;  %3074 = vmatprep.mubr.bf16.mxu0 %v2653_v47  ;;  %v5149_v61 = vld [vmem:[%s6590_s3 + $0x148] sm:$0xff]   ;;  %v2571_v24 = vld [vmem:[#allocation2 + $0x20] sm:$0xff]  ;;  %v2590_v35 = vld [vmem:[#allocation2 + $0xb0] sm:$0xff] }
 0x2e4   : > { %4319 = vmatpush3.bf16.msra.mxu1 %v5134_v62  ;;  %4298 = vmatprep.subr.bf16.mxu0 %v5135_v63  ;;  %v2654_v62 = vpack.c.bf16 %v2648_v58, %v2642_v57  ;;  %v5150_v63 = vld [vmem:[%s6590_s3 + $0x108] sm:$0xff]   ;;  %v2611_v29 = vrot.slane %v2571_v24, %v5998_v2  ;;  %v2584_v34 = vld [vmem:[#allocation2 + $0x80] sm:$0xff]  ;;  %v2650_v15 = vmul.f32 %v2635_v31, %v2590_v35  ;;  %v5162_v44 = vld [vmem:[%s6590_s3 + $0x138] sm:$0xff]  }
 0x2e5   : > { %4320 = vmatprep.subr.bf16.mxu1 %v5136_v0  ;;  %3115 = vmatprep.mubr.bf16.mxu1 %v2655_v52  ;;  %v5151_v0 = vld [vmem:[%s6590_s3 + $0x150] sm:$0xff]   ;;  %v5165_v54 = vld [vmem:[#allocation9] ss:$24 sps:$4 sm:$0x3f]  }
 0x2e6   : > { %v2644_v14 = vmul.f32 %v2611_v29, %v2584_v34  ;;  %v5163_v39 = vld [vmem:[#allocation9 + $0x4] ss:$24 sps:$4 sm:$0x3f]   ;;  %v5168_v43 = vld [vmem:[#allocation9 + $0x8] ss:$24 sps:$4 sm:$0x3f]  }
 0x2e7   : > { %4299 = vmatpush3.bf16.msra.mxu0 %v5137_v1  ;;  %v5152_v1 = vld [vmem:[%s6590_s3 + $0x110] sm:$0xff]   ;;  %v3240_v45 = vsel %vm3238_vm0, %v5165_v54, 0  ;;  %v3246_v46 = vsel %vm3238_vm0, %v5168_v43, 0  ;;  %v5169_v47 = vld [vmem:[#allocation9 + $0x14] ss:$24 sps:$4 sm:$0x3f]  }
 0x2e8   : > { %4321 = vmatpush3.bf16.msra.mxu1 %v5138_v3  ;;  %4300 = vmatprep.subr.bf16.mxu0 %v5139_v4  ;;  %v5153_v3 = vld [vmem:[%s6590_s3 + $0x158] sm:$0xff]   ;;  %v3518_v48 = vld [vmem:[%s6592_s5 + $0x180] sm:$0xff]  ;;  %v3519_v49 = vld [vmem:[%s6592_s5 + $0x188] sm:$0xff] }
 0x2e9   : > { %4322 = vmatprep.subr.bf16.mxu1 %v5140_v5  ;;  %v5154_v4 = vld [vmem:[%s6590_s3 + $0x118] sm:$0xff]   ;;  %v5155_v5 = vld [vmem:[%s6590_s3 + $0x160] sm:$0xff]   ;;  %v4491_v50 = vpack.c.bf16 %v3519_v49, %v3518_v48 }
 0x2ea   : > { %v5166_v41 = vld [vmem:[#allocation9 + $0xc] ss:$24 sps:$4 sm:$0x3f]  }
 0x2eb   : > { %4301 = vmatpush3.bf16.msra.mxu0 %v5141_v6  ;;  %v2572_v6 = vld [vmem:[#allocation2 + $0x28] sm:$0xff] }
 0x2ec   : > { %4323 = vmatpush3.bf16.msra.mxu1 %v5142_v7  ;;  %4302 = vmatprep.subr.bf16.mxu0 %v5143_v8  ;;  %v2578_v7 = vld [vmem:[#allocation2 + $0x58] sm:$0xff]  ;;  %v2585_v8 = vld [vmem:[#allocation2 + $0x88] sm:$0xff] }
 0x2ed   : > { %4324 = vmatprep.subr.bf16.mxu1 %v5144_v9  ;;  %v2591_v9 = vld [vmem:[#allocation2 + $0xb8] sm:$0xff] }
 0x2ef   : > { %4303 = vmatpush3.bf16.msra.mxu0 %v5145_v10  ;;  %v2615_v10 = vrot.slane %v2572_v6, %v5998_v2 }
 0x2f0   : > { %4325 = vmatpush3.bf16.msra.mxu1 %v5146_v11  ;;  %4332 = vmatprep.subr.bf16.mxu0 %v5147_v56  ;;  %v2639_v11 = vrot.slane %v2578_v7, %v5998_v2  ;;  %v2656_v2 = vpack.c.bf16 %v2650_v15, %v2644_v14 }
 0x2f1   : > { %v2645_v18 = vmul.f32 %v2615_v10, %v2585_v8  ;;  %4277 = vmatprep.subr.msk.bf16.mxu1 %vm3238_vm0, %v5166_v41 }
 0x2f2   : > { %3075 = vmatmul.mubr.bf16.vlgmr.msra.gmra.mrb[0].mxu0 %v2652_v60  ;;  %v2651_v20 = vmul.f32 %v2639_v11, %v2591_v9 }
 0x2f3   : > { %3116 = vmatmul.mubr.bf16.vlgmr.msra.gmra.mrb[0].mxu1 %v2654_v62  ;;  %4333 = vmatpush3.bf16.msra.mxu0 %v5148_v59 }
 0x2f4   : > { %4334 = vmatprep.subr.bf16.mxu0 %v5149_v61  ;;  %v2657_v21 = vpack.c.bf16 %v2651_v20, %v2645_v18  ;;  %3332 = vmatprep.mubr.bf16.mxu1 %v5408_v42 }
 0x2f5   : > { %3301 = vmatpush1.bf16.msra.mxu1 %v3246_v46 }
 0x2f6   : > { %3156 = vmatprep.mubr.bf16.mxu0 %v2657_v21  ;;  %4279 = vmatprep.subr.msk.bf16.mxu1 %vm3238_vm0, %v5169_v47 }
 0x2f7   : > { %4335 = vmatpush3.bf16.msra.mxu0 %v5150_v63 }
 0x2f8   : > { %4336 = vmatprep.subr.bf16.mxu0 %v5151_v0 }
 0x2fb   : > { %4337 = vmatpush3.bf16.msra.mxu0 %v5152_v1 }
 0x2fc   : > { %4338 = vmatprep.subr.bf16.mxu0 %v5153_v3 }
 0x2ff   : > { %4339 = vmatpush3.bf16.msra.mxu0 %v5154_v4 }
 0x300   : > { %4340 = vmatprep.subr.bf16.mxu0 %v5155_v5 }
 0x303   : > { %4341 = vmatpush3.bf16.msra.mxu0 %v5156_v13 }
 0x304   : > { %4342 = vmatprep.subr.bf16.mxu0 %v5157_v23 }
 0x307   : > { %4343 = vmatpush3.bf16.msra.mxu0 %v5158_v22 }
 0x308   : > { %4344 = vmatprep.subr.bf16.mxu0 %v5159_v27 }
 0x30b   : > { %4345 = vmatpush3.bf16.msra.mxu0 %v5160_v33 }
 0x30c   : > { %4346 = vmatprep.subr.bf16.mxu0 %v5161_v36 }
 0x30f   : > { %4347 = vmatpush3.bf16.msra.mxu0 %v5162_v44 }
 0x310   : > { %4275 = vmatprep.subr.msk.bf16.mxu0 %vm3238_vm0, %v5163_v39 }
 0x312   : > { %3157 = vmatmul.mubr.bf16.vlgmr.msra.gmra.mrb[4].mxu0 %v2656_v2 }
 0x313   : > { %3289 = vmatprep.mubr.bf16.mxu0 %v5408_v42  ;;  %3258 = vmatpush1.bf16.msra.mxu0 %v3240_v45 }
 0x314   : > { %4492 = vmatprep.subr.bf16.mxu0 %v4491_v50 }
 0x3c5   : > { %v4304_v51 = vpop.f32.mrb[0].mxu0 }
 0x3c6   : > { %v4326_v52 = vpop.f32.mrb[0].mxu1  ;;  %v4305_v55 = vpop.f32.mrb[1].mxu0 }
 0x3c7   : > { %v4306_v56 = vadd.f32 %v4305_v55, %v4304_v51  ;;  %v4327_v57 = vpop.f32.mrb[1].mxu1  ;;  %v4307_v58 = vpop.f32.mrb[2].mxu0 }
 0x3c8   : > { %v4328_v59 = vadd.f32 %v4327_v57, %v4326_v52  ;;  %v4329_v60 = vpop.f32.mrb[2].mxu1  ;;  %v4308_v61 = vpop.f32.mrb[3].mxu0 }
 0x3c9   : > { %v4309_v62 = vadd.f32 %v4308_v61, %v4307_v58  ;;  %v4330_v63 = vpop.f32.mrb[3].mxu1 }
 0x3ca   : > { %v3118_v0 = vadd.f32 %v4328_v59, %v4306_v56  ;;  %v4331_v1 = vadd.f32 %v4330_v63, %v4329_v60  ;;  %v5171_v59 = vld [vmem:[#allocation9 + $0x10] ss:$24 sps:$4 sm:$0x3f]   ;;  %v3486_v60 = vld [vmem:[%s6592_s5 + $0x80] sm:$0xff] }
 0x3cb   : > { %v3502_v63 = vld [vmem:[%s6592_s5 + $0x100] sm:$0xff] }
 0x3cc   : > { %v3121_v3 = vadd.f32 %v4331_v1, %v4309_v62  ;;  %v3487_v62 = vld [vmem:[%s6592_s5 + $0x88] sm:$0xff] }
 0x3e5   : > { %v4348_v4 = vpop.f32.mrb[4].mxu0 }
 0x3e6   : > { %v4349_v5 = vpop.f32.mrb[5].mxu0 }
 0x3e7   : > { %v4350_v6 = vadd.f32 %v4349_v5, %v4348_v4  ;;  %v4351_v7 = vpop.f32.mrb[6].mxu0  ;;  %v3520_v4 = vld [vmem:[%s6592_s5 + $0x190] sm:$0xff]  ;;  %v3521_v5 = vld [vmem:[%s6592_s5 + $0x198] sm:$0xff] }
 0x3e8   : > { %v4352_v8 = vpop.f32.mrb[7].mxu0 }
 0x3e9   : > { %v3159_v9 = vadd.f32 %v4350_v6, %v3118_v0  ;;  %v4353_v10 = vadd.f32 %v4352_v8, %v4351_v7  ;;  %v3503_v0 = vld [vmem:[%s6592_s5 + $0x108] sm:$0xff]  ;;  %v3252_v7 = vsel %vm3238_vm0, %v5171_v59, 0  ;;  %v4459_v8 = vpack.c.bf16 %v3487_v62, %v3486_v60 }
 0x3ea   : > { %v3495_v59 = vld [vmem:[%s6592_s5 + $0xc8] sm:$0xff] }
 0x3eb   : > { %v3166_v11 = vsel %vm3165_vm1, %v3159_v9, -inf  ;;  %v3162_v13 = vadd.f32 %v4353_v10, %v3121_v3  ;;  %v4495_v10 = vpack.c.bf16 %v3521_v5, %v3520_v4  ;;  %v3479_v62 = vld [vmem:[%s6592_s5 + $0x48] sm:$0xff] }
 0x3ec   : > { %v3167_v23 = vrot.slane %v3166_v11, 4  ;;  %v3511_v4 = vld [vmem:[%s6592_s5 + $0x148] sm:$0xff] }
 0x3ed   : > { %v3173_v18 = vsel %vm3165_vm1, %v3162_v13, -inf }
 0x3ee   : > { %v3168_v20 = vmax.f32 %v3166_v11, %v3167_v23  ;;  %v3174_v21 = vrot.slane %v3173_v18, 4  ;;  %v3504_v11 = vld [vmem:[%s6592_s5 + $0x110] sm:$0xff]  ;;  %v3522_v23 = vld [vmem:[%s6592_s5 + $0x1a0] sm:$0xff] }
 0x3f0   : > { %v3169_v22 = vrot.slane %v3168_v20, 2  ;;  %v3175_v24 = vmax.f32 %v3173_v18, %v3174_v21  ;;  %v3523_v18 = vld [vmem:[%s6592_s5 + $0x1a8] sm:$0xff] }
 0x3f1   : > { %v3471_v21 = vld [vmem:[%s6592_s5 + $0x8] sm:$0xff] }
 0x3f2   : > { %v3170_v25 = vmax.f32 %v3168_v20, %v3169_v22  ;;  %v3176_v27 = vrot.slane %v3175_v24, 2  ;;  %v3470_v20 = vld [vmem:[%s6592_s5] sm:$0xff]  ;;  %v3488_v22 = vld [vmem:[%s6592_s5 + $0x90] sm:$0xff] }
 0x3f4   : > { %v3171_v29 = vrot.slane %v3170_v25, 1  ;;  %v3177_v31 = vmax.f32 %v3175_v24, %v3176_v27  ;;  %v3506_v27 = vld [vmem:[%s6592_s5 + $0x120] sm:$0xff] }
 0x3f6   : > { %v3172_v33 = vmax.f32 %v3170_v25, %v3171_v29  ;;  %v3178_v34 = vrot.slane %v3177_v31, 1  ;;  %v3489_v25 = vld [vmem:[%s6592_s5 + $0x98] sm:$0xff]  ;;  %v3507_v29 = vld [vmem:[%s6592_s5 + $0x128] sm:$0xff] }
 0x3f8   : > { %v3180_v35 = vsub.f32 %v3159_v9, %v3172_v33  ;;  %v3179_v36 = vmax.f32 %v3177_v31, %v3178_v34  ;;  %v4493_v9 = vpack.c.bf16 %v3503_v0, %v3502_v63  ;;  %v4461_v31 = vpack.c.bf16 %v3471_v21, %v3470_v20  ;;  %v3472_v34 = vld [vmem:[%s6592_s5 + $0x10] sm:$0xff]  ;;  %v3526_v63 = vld [vmem:[%s6592_s5 + $0x1c0] sm:$0xff]  ;;  %v3513_v21 = vld [vmem:[%s6592_s5 + $0x158] sm:$0xff] }
 0x3f9   : > { %v4463_v33 = vpack.c.bf16 %v3489_v25, %v3488_v22  ;;  %v3512_v20 = vld [vmem:[%s6592_s5 + $0x150] sm:$0xff]  ;;  %v3498_v25 = vld [vmem:[%s6592_s5 + $0xe0] sm:$0xff] }
 0x3fa   : > { %v3182_v14 = vmul.f32 1.442695, %v3180_v35  ;;  %v3181_v15 = vsub.f32 %v3162_v13, %v3179_v36  ;;  %v3505_v13 = vld [vmem:[%s6592_s5 + $0x118] sm:$0xff]  ;;  %v4501_v36 = vpack.c.bf16 %v3507_v29, %v3506_v27  ;;  %v3482_v29 = vld [vmem:[%s6592_s5 + $0x60] sm:$0xff] }
 0x3fb   : > { %v4497_v24 = vpack.c.bf16 %v3505_v13, %v3504_v11  ;;  %v3473_v35 = vld [vmem:[%s6592_s5 + $0x18] sm:$0xff]  ;;  %v3528_v13 = vld [vmem:[%s6592_s5 + $0x1d0] sm:$0xff] }
 0x3fc   : > { %5172 = vpow2.f32 %v3182_v14  ;;  %v3184_v44 = vmul.f32 1.442695, %v3181_v15  ;;  %v3490_v14 = vld [vmem:[%s6592_s5 + $0xa0] sm:$0xff]  ;;  %v3491_v15 = vld [vmem:[%s6592_s5 + $0xa8] sm:$0xff]  ;;  %v3481_v11 = vld [vmem:[%s6592_s5 + $0x58] sm:$0xff] }
 0x3fe   : > { %5174 = vpow2.f32 %v3184_v44  ;;  %v4465_v44 = vpack.c.bf16 %v3473_v35, %v3472_v34  ;;  %v3531_v35 = vld [vmem:[%s6592_s5 + $0x1e8] sm:$0xff] }
 0x406   : > { %v5173_v2 = vpop.eup %5172 }
 0x407   : > { %v3186_v39 = vsel %vm3165_vm1, %v5173_v2, 0.0 }
 0x408   : > { %v5175_v54 = vpop.eup %5174  ;;  %v3187_v41 = vrot.slane %v3186_v39, 4 }
 0x409   : > { %v3193_v43 = vsel %vm3165_vm1, %v5175_v54, 0.0 }
 0x40a   : > { %v3188_v45 = vadd.f32 %v3187_v41, %v3186_v39  ;;  %v3194_v46 = vrot.slane %v3193_v43, 4  ;;  %v3474_v39 = vld [vmem:[%s6592_s5 + $0x20] sm:$0xff]  ;;  %v3492_v41 = vld [vmem:[%s6592_s5 + $0xb0] sm:$0xff] }
 0x40c   : > { %v3189_v47 = vrot.slane %v3188_v45, 2  ;;  %v3195_v48 = vadd.f32 %v3194_v46, %v3193_v43  ;;  %v3493_v43 = vld [vmem:[%s6592_s5 + $0xb8] sm:$0xff] }
 0x40d   : > { %v4471_v46 = vpack.c.bf16 %v3493_v43, %v3492_v41  ;;  %v3484_v41 = vld [vmem:[%s6592_s5 + $0x70] sm:$0xff]  ;;  %v3485_v43 = vld [vmem:[%s6592_s5 + $0x78] sm:$0xff] }
 0x40e   : > { %v3190_v49 = vadd.f32 %v3189_v47, %v3188_v45  ;;  %v3196_v50 = vrot.slane %v3195_v48, 2  ;;  %v3476_v47 = vld [vmem:[%s6592_s5 + $0x30] sm:$0xff] }
 0x410   : > { %v3191_v51 = vrot.slane %v3190_v49, 1  ;;  %v3197_v52 = vadd.f32 %v3196_v50, %v3195_v48  ;;  %v3477_v48 = vld [vmem:[%s6592_s5 + $0x38] sm:$0xff] }
 0x411   : > { %v4473_v50 = vpack.c.bf16 %v3477_v48, %v3476_v47  ;;  %v3533_v47 = vld [vmem:[%s6592_s5 + $0x1f8] sm:$0xff]  ;;  %v3516_v48 = vld [vmem:[%s6592_s5 + $0x170] sm:$0xff] }
 0x412   : > { %v3192_v55 = vadd.f32 %v3191_v51, %v3190_v49  ;;  %v3198_v56 = vrot.slane %v3197_v52, 1  ;;  %v3524_v49 = vld [vmem:[%s6592_s5 + $0x1b0] sm:$0xff]  ;;  %v3525_v51 = vld [vmem:[%s6592_s5 + $0x1b8] sm:$0xff] }
 0x414   : > { %5176 = vrcp.f32 %v3192_v55  ;;  %v3199_v57 = vadd.f32 %v3198_v56, %v3197_v52  ;;  %v3508_v52 = vld [vmem:[%s6592_s5 + $0x130] sm:$0xff]  ;;  %v3509_v55 = vld [vmem:[%s6592_s5 + $0x138] sm:$0xff]  ;;  %v4503_v56 = vpack.c.bf16 %v3525_v51, %v3524_v49 }
 0x415   : > { %v3517_v49 = vld [vmem:[%s6592_s5 + $0x178] sm:$0xff] }
 0x416   : > { %5178 = vrcp.f32 %v3199_v57  ;;  %v4505_v57 = vpack.c.bf16 %v3509_v55, %v3508_v52  ;;  %v4521_v51 = vpack.c.bf16 %v3517_v49, %v3516_v48  ;;  %v3550_v52 = vld [vmem:[%s6592_s5 + $0x280] sm:$0xff]  ;;  %v3551_v55 = vld [vmem:[%s6592_s5 + $0x288] sm:$0xff] }
 0x41e   : > { %v5177_v58 = vpop.eup %5176 }
 0x41f   : > { %v3202_v1 = vmul.f32 %v5177_v58, %v5173_v2  ;;  %v4467_v2 = vpack.c.bf16 %v3491_v15, %v3490_v14  ;;  %v3494_v58 = vld [vmem:[%s6592_s5 + $0xc0] sm:$0xff]  ;;  %v3515_v14 = vld [vmem:[%s6592_s5 + $0x168] sm:$0xff] }
 0x420   : > { %v5179_v61 = vpop.eup %5178  ;;  %v4475_v60 = vpack.c.bf16 %v3495_v59, %v3494_v58  ;;  %v6433_v58 = vld [vmem:[%s6592_s5 + $0x208] sm:$0xff]  ;;  %v6438_v59 = vld [vmem:[%s6592_s5 + $0x290] sm:$0xff] }
 0x421   : > { %v3203_v3 = vmul.f32 %v5179_v61, %v5175_v54  ;;  %v3475_v54 = vld [vmem:[%s6592_s5 + $0x28] sm:$0xff]  ;;  %v3478_v61 = vld [vmem:[%s6592_s5 + $0x40] sm:$0xff] }
 0x422   : > { %v4469_v45 = vpack.c.bf16 %v3475_v54, %v3474_v39  ;;  %v4477_v0 = vpack.c.bf16 %v3479_v62, %v3478_v61  ;;  %v3501_v39 = vld [vmem:[%s6592_s5 + $0xf8] sm:$0xff] }
 0x423   : > { %v3204_v6 = vpack.c.bf16 %v3203_v3, %v3202_v1  ;;  %v3527_v1 = vld [vmem:[%s6592_s5 + $0x1c8] sm:$0xff]  ;;  %v3510_v3 = vld [vmem:[%s6592_s5 + $0x140] sm:$0xff] }
 0x424   : > { %v4507_v5 = vpack.c.bf16 %v3527_v1, %v3526_v63 }
 0x425   : > { %4276 = vmatmul.mubr.msk.bf16.vlgmr.msra.gmra.mrb[8].mxu0 %vm3165_vm1, %v3204_v6  ;;  %4278 = vmatmul.mubr.msk.bf16.vlgmr.msra.gmra.mrb[4].mxu1 %vm3165_vm1, %v3204_v6 }
 0x426   : > { %3344 = vmatpush1.bf16.msra.mxu1 %v3252_v7  ;;  %3375 = vmatprep.mubr.bf16.mxu1 %v5408_v42  ;;  %v4499_v42 = vpack.c.bf16 %v3523_v18, %v3522_v23  ;;  %v3496_v7 = vld [vmem:[%s6592_s5 + $0xd0] sm:$0xff]  ;;  %v3529_v18 = vld [vmem:[%s6592_s5 + $0x1d8] sm:$0xff] }
 0x427   : > { %4460 = vmatprep.subr.bf16.mxu1 %v4459_v8  ;;  %4494 = vmatpush3.bf16.msra.mxu0 %v4493_v9  ;;  %v3497_v8 = vld [vmem:[%s6592_s5 + $0xd8] sm:$0xff]  ;;  %v4511_v22 = vpack.c.bf16 %v3529_v18, %v3528_v13 }
 0x428   : > { %4496 = vmatprep.subr.bf16.mxu0 %v4495_v10  ;;  %v4479_v9 = vpack.c.bf16 %v3497_v8, %v3496_v7  ;;  %v3480_v10 = vld [vmem:[%s6592_s5 + $0x50] sm:$0xff] }
 0x429   : > { %v4481_v23 = vpack.c.bf16 %v3481_v11, %v3480_v10 }
 0x42b   : > { %4498 = vmatpush3.bf16.msra.mxu0 %v4497_v24  ;;  %v4513_v24 = vpack.c.bf16 %v3513_v21, %v3512_v20 }
 0x42c   : > { %4500 = vmatprep.subr.bf16.mxu0 %v4499_v42  ;;  %v3499_v42 = vld [vmem:[%s6592_s5 + $0xe8] sm:$0xff] }
 0x42d   : > { %4280 = vmatmul.mubr.msk.bf16.vlgmr.msra.gmra.mrb[8].mxu1 %vm3165_vm1, %v3204_v6  ;;  %v4509_v6 = vpack.c.bf16 %v3511_v4, %v3510_v3  ;;  %v4483_v27 = vpack.c.bf16 %v3499_v42, %v3498_v25 }
 0x42e   : > { %4462 = vmatpush3.bf16.msra.mxu1 %v4461_v31  ;;  %v3483_v31 = vld [vmem:[%s6592_s5 + $0x68] sm:$0xff] }
 0x42f   : > { %4464 = vmatprep.subr.bf16.mxu1 %v4463_v33  ;;  %4502 = vmatpush3.bf16.msra.mxu0 %v4501_v36  ;;  %v3530_v33 = vld [vmem:[%s6592_s5 + $0x1e0] sm:$0xff]  ;;  %v4485_v34 = vpack.c.bf16 %v3483_v31, %v3482_v29 }
 0x430   : > { %4504 = vmatprep.subr.bf16.mxu0 %v4503_v56  ;;  %v3514_v36 = vld [vmem:[%s6592_s5 + $0x160] sm:$0xff]  ;;  %v4515_v15 = vpack.c.bf16 %v3531_v35, %v3530_v33  ;;  %v4523_v56 = vpack.c.bf16 %v3551_v55, %v3550_v52 }
 0x432   : > { %4466 = vmatpush3.bf16.msra.mxu1 %v4465_v44  ;;  %v4517_v44 = vpack.c.bf16 %v3515_v14, %v3514_v36 }
 0x433   : > { %4468 = vmatprep.subr.bf16.mxu1 %v4467_v2  ;;  %4506 = vmatpush3.bf16.msra.mxu0 %v4505_v57  ;;  %v3500_v2 = vld [vmem:[%s6592_s5 + $0xf0] sm:$0xff]  ;;  %v6428_v57 = vld [vmem:[%s6592_s5 + $0x200] sm:$0xff] }
 0x434   : > { %4508 = vmatprep.subr.bf16.mxu0 %v4507_v5  ;;  %v4487_v54 = vpack.c.bf16 %v3501_v39, %v3500_v2  ;;  %v4525_v8 = vpack.c.bf16 %v6433_v58, %v6428_v57  ;;  %v3556_v57 = vld [vmem:[%s6592_s5 + $0x2b0] sm:$0xff]  ;;  %v3557_v58 = vld [vmem:[%s6592_s5 + $0x2b8] sm:$0xff] }
 0x436   : > { %4470 = vmatpush3.bf16.msra.mxu1 %v4469_v45  ;;  %v3532_v45 = vld [vmem:[%s6592_s5 + $0x1f0] sm:$0xff] }
 0x437   : > { %4472 = vmatprep.subr.bf16.mxu1 %v4471_v46  ;;  %4510 = vmatpush3.bf16.msra.mxu0 %v4509_v6  ;;  %v4489_v46 = vpack.c.bf16 %v3485_v43, %v3484_v41 }
 0x438   : > { %4512 = vmatprep.subr.bf16.mxu0 %v4511_v22 }
 0x43a   : > { %4474 = vmatpush3.bf16.msra.mxu1 %v4473_v50  ;;  %v4519_v50 = vpack.c.bf16 %v3533_v47, %v3532_v45 }
 0x43b   : > { %4476 = vmatprep.subr.bf16.mxu1 %v4475_v60  ;;  %4514 = vmatpush3.bf16.msra.mxu0 %v4513_v24  ;;  %v6443_v60 = vld [vmem:[%s6592_s5 + $0x298] sm:$0xff] }
 0x43c   : > { %4516 = vmatprep.subr.bf16.mxu0 %v4515_v15 }
 0x43e   : > { %4478 = vmatpush3.bf16.msra.mxu1 %v4477_v0 }
 0x43f   : > { %4480 = vmatprep.subr.bf16.mxu1 %v4479_v9  ;;  %4518 = vmatpush3.bf16.msra.mxu0 %v4517_v44  ;;  %v4527_v9 = vpack.c.bf16 %v6443_v60, %v6438_v59 }
 0x440   : > { %4520 = vmatprep.subr.bf16.mxu0 %v4519_v50 }
 0x442   : > { %4482 = vmatpush3.bf16.msra.mxu1 %v4481_v23 }
 0x443   : > { %4484 = vmatprep.subr.bf16.mxu1 %v4483_v27  ;;  %4522 = vmatpush3.bf16.msra.mxu0 %v4521_v51 }
 0x446   : > { %4486 = vmatpush3.bf16.msra.mxu1 %v4485_v34 }
 0x447   : > { %4488 = vmatprep.subr.bf16.mxu1 %v4487_v54 }
 0x44a   : > { %4490 = vmatpush3.bf16.msra.mxu1 %v4489_v46 }
 0x44b   : > { %4524 = vmatprep.subr.bf16.mxu1 %v4523_v56 }
 0x4f8   : > { %v3291_v61 = vpop.f32.mrb[8].mxu0  ;;  %v3334_v62 = vpop.f32.mrb[4].mxu1 }
 0x4f9   : > { %v3386_v63 = vmul.f32 %v6003_v12, %v3291_v61  ;;  %v3388_v0 = vmul.f32 %v6011_v26, %v3334_v62  ;;  %v3293_v1 = vpop.f32.mrb[9].mxu0  ;;  %v3336_v3 = vpop.f32.mrb[5].mxu1 }
 0x4fa   : > { %v3387_v4 = vmul.f32 %v6005_v16, %v3293_v1  ;;  %v3389_v5 = vmul.f32 %v6013_v28, %v3336_v3  ;;  %v3295_v6 = vpop.f32.mrb[10].mxu0  ;;  %v3338_v7 = vpop.f32.mrb[6].mxu1 }
 0x4fb   : > { %v3398_v10 = vrot.slane %v3386_v63, 4  ;;  %v3410_v11 = vrot.slane %v3388_v0, 4  ;;  %v3392_v12 = vmul.f32 %v6007_v17, %v3295_v6  ;;  %v3394_v26 = vmul.f32 %v6015_v30, %v3338_v7  ;;  %v3297_v13 = vpop.f32.mrb[11].mxu0  ;;  %v3340_v23 = vpop.f32.mrb[7].mxu1 }
 0x4fc   : > { %v3404_v18 = vrot.slane %v3387_v4, 4  ;;  %v3416_v16 = vrot.slane %v3389_v5, 4  ;;  %v3393_v28 = vmul.f32 %v6009_v19, %v3297_v13  ;;  %v3395_v20 = vmul.f32 %v6017_v32, %v3340_v23 }
 0x4fd   : > { %v3399_v21 = vadd.f32 %v3398_v10, %v3386_v63  ;;  %v3411_v22 = vadd.f32 %v3410_v11, %v3388_v0  ;;  %v3434_v24 = vrot.slane %v3392_v12, 4  ;;  %v3446_v25 = vrot.slane %v3394_v26, 4 }
 0x4fe   : > { %v3405_v42 = vadd.f32 %v3404_v18, %v3387_v4  ;;  %v3417_v27 = vadd.f32 %v3416_v16, %v3389_v5  ;;  %v3440_v29 = vrot.slane %v3393_v28, 4  ;;  %v3452_v31 = vrot.slane %v3395_v20, 4 }
 0x4ff   : > { %v3400_v33 = vrot.slane %v3399_v21, 2  ;;  %v3412_v17 = vrot.slane %v3411_v22, 2  ;;  %v3435_v34 = vadd.f32 %v3434_v24, %v3392_v12  ;;  %v3447_v30 = vadd.f32 %v3446_v25, %v3394_v26 }
 0x500   : > { %v3406_v35 = vrot.slane %v3405_v42, 2  ;;  %v3418_v36 = vrot.slane %v3417_v27, 2  ;;  %v3441_v14 = vadd.f32 %v3440_v29, %v3393_v28  ;;  %v3453_v15 = vadd.f32 %v3452_v31, %v3395_v20  ;;  %v3377_v19 = vpop.f32.mrb[8].mxu1 }
 0x501   : > { %v3401_v44 = vadd.f32 %v3400_v33, %v3399_v21  ;;  %v3413_v32 = vadd.f32 %v3412_v17, %v3411_v22  ;;  %v3436_v2 = vrot.slane %v3435_v34, 2  ;;  %v3448_v39 = vrot.slane %v3447_v30, 2  ;;  %v3379_v54 = vpop.f32.mrb[9].mxu1  ;;  %v3554_v33 = vld [vmem:[%s6592_s5 + $0x2a0] sm:$0xff]  ;;  %v3555_v17 = vld [vmem:[%s6592_s5 + $0x2a8] sm:$0xff] }
 0x502   : > { %v3407_v41 = vadd.f32 %v3406_v35, %v3405_v42  ;;  %v3419_v43 = vadd.f32 %v3418_v36, %v3417_v27  ;;  %v3442_v45 = vrot.slane %v3441_v14, 2  ;;  %v3454_v46 = vrot.slane %v3453_v15, 2  ;;  %v3381_v47 = vpop.f32.mrb[10].mxu1 }
 0x503   : > { %v3402_v48 = vrot.slane %v3401_v44, 1  ;;  %v3414_v49 = vrot.slane %v3413_v32, 1  ;;  %v3437_v50 = vadd.f32 %v3436_v2, %v3435_v34  ;;  %v3449_v51 = vadd.f32 %v3448_v39, %v3447_v30  ;;  %v3383_v52 = vpop.f32.mrb[11].mxu1  ;;  %v3539_v2 = vld [vmem:[%s6592_s5 + $0x228] sm:$0xff] }
 0x504   : > { %v3408_v55 = vrot.slane %v3407_v41, 1  ;;  %v3420_v56 = vrot.slane %v3419_v43, 1  ;;  %v3443_v61 = vadd.f32 %v3442_v45, %v3441_v14  ;;  %v3455_v62 = vadd.f32 %v3454_v46, %v3453_v15  ;;  %v3540_v45 = vld [vmem:[%s6592_s5 + $0x230] sm:$0xff]  ;;  %v3541_v46 = vld [vmem:[%s6592_s5 + $0x238] sm:$0xff] }
 0x505   : > { %v3403_v63 = vadd.f32 %v3402_v48, %v3401_v44  ;;  %v3415_v0 = vadd.f32 %v3414_v49, %v3413_v32  ;;  %v3438_v1 = vrot.slane %v3437_v50, 1  ;;  %v3450_v3 = vrot.slane %v3449_v51, 1  ;;  %v3538_v32 = vld [vmem:[%s6592_s5 + $0x220] sm:$0xff] }
 0x506   : > { %v3444_v4 = vrot.slane %v3443_v61, 1  ;;  %v3456_v5 = vrot.slane %v3455_v62, 1  ;;  %v3390_v6 = vmul.f32 %v6019_v37, %v3377_v19  ;;  %v3391_v7 = vmul.f32 %v6021_v53, %v3379_v54 }
 0x507   : > { %v3439_v10 = vadd.f32 %v3438_v1, %v3437_v50  ;;  %v3451_v11 = vadd.f32 %v3450_v3, %v3449_v51  ;;  %v3396_v12 = vmul.f32 %v6023_v38, %v3381_v47  ;;  %v3397_v26 = vmul.f32 %v6025_v40, %v3383_v52  ;;  %v3536_v38 = vld [vmem:[%s6592_s5 + $0x210] sm:$0xff]  ;;  %v3537_v40 = vld [vmem:[%s6592_s5 + $0x218] sm:$0xff]  ;;  %v3558_v51 = vld [vmem:[%s6592_s5 + $0x2c0] sm:$0xff] }
 0x508   : > { %v3422_v13 = vrot.slane %v3390_v6, 4  ;;  %v3428_v23 = vrot.slane %v3391_v7, 4  ;;  %v3409_v18 = vadd.f32 %v3408_v55, %v3407_v41  ;;  %v3445_v16 = vadd.f32 %v3444_v4, %v3443_v61  ;;  %v3559_v52 = vld [vmem:[%s6592_s5 + $0x2c8] sm:$0xff]  ;;  %v3560_v1 = vld [vmem:[%s6592_s5 + $0x2d0] sm:$0xff]  ;;  %v3561_v3 = vld [vmem:[%s6592_s5 + $0x2d8] sm:$0xff] }
 0x509   : > { %v3458_v28 = vrot.slane %v3396_v12, 4  ;;  %v3464_v20 = vrot.slane %v3397_v26, 4  ;;  %v3421_v21 = vadd.f32 %v3420_v56, %v3419_v43  ;;  %v3457_v22 = vadd.f32 %v3456_v5, %v3455_v62 }
 0x50a   : > { %v3423_v24 = vadd.f32 %v3422_v13, %v3390_v6  ;;  %v3429_v25 = vadd.f32 %v3428_v23, %v3391_v7  ;;  %v3587_v37 = vsel %vm3585_vm2, %v3445_v16, %v3409_v18  ;;  %v3586_v53 = vsel %vm3585_vm2, %v3439_v10, %v3403_v63  ;;  %v3542_v63 = vld [vmem:[%s6592_s5 + $0x240] sm:$0xff]  ;;  %v3544_v6 = vld [vmem:[%s6592_s5 + $0x250] sm:$0xff]  ;;  %v3545_v7 = vld [vmem:[%s6592_s5 + $0x258] sm:$0xff] }
 0x50b   : > { %v3459_v42 = vadd.f32 %v3458_v28, %v3396_v12  ;;  %v3465_v27 = vadd.f32 %v3464_v20, %v3397_v26  ;;  %3662 = vmatprep.mubr.f32.mxu1 %v3587_v37  ;;  %v3589_v29 = vsel %vm3585_vm2, %v3457_v22, %v3421_v21  ;;  %v3588_v31 = vsel %vm3585_vm2, %v3451_v11, %v3415_v0  ;;  %v3543_v0 = vld [vmem:[%s6592_s5 + $0x248] sm:$0xff]  ;;  %v3562_v10 = vld [vmem:[%s6592_s5 + $0x2e0] sm:$0xff]  ;;  %v3564_v18 = vld [vmem:[%s6592_s5 + $0x2f0] sm:$0xff] }
 0x50c   : > { %v3424_v34 = vrot.slane %v3423_v24, 2  ;;  %v3430_v30 = vrot.slane %v3429_v25, 2  ;;  %3732 = vmatprep.mubr.f32.mxu0 %v3589_v29  ;;  %3663 = vmatmul.mubr.f32.vlgmr.msra.gmra.mrb[12].mxu1 %v3586_v53  ;;  %v4529_v14 = vpack.c.bf16 %v3537_v40, %v3536_v38  ;;  %v4531_v44 = vpack.c.bf16 %v3555_v17, %v3554_v33  ;;  %v3563_v11 = vld [vmem:[%s6592_s5 + $0x2e8] sm:$0xff]  ;;  %v3546_v13 = vld [vmem:[%s6592_s5 + $0x260] sm:$0xff]  ;;  %v3565_v16 = vld [vmem:[%s6592_s5 + $0x2f8] sm:$0xff] }
 0x50d   : > { %v3460_v35 = vrot.slane %v3459_v42, 2  ;;  %v3466_v36 = vrot.slane %v3465_v27, 2  ;;  %3733 = vmatmul.mubr.f32.vlgmr.msra.gmra.mrb[12].mxu0 %v3588_v31  ;;  %4526 = vmatpush3.bf16.msra.mxu1 %v4525_v8  ;;  %v4533_v41 = vpack.c.bf16 %v3539_v2, %v3538_v32  ;;  %v4535_v43 = vpack.c.bf16 %v3557_v58, %v3556_v57  ;;  %v3547_v23 = vld [vmem:[%s6592_s5 + $0x268] sm:$0xff]  ;;  %v3548_v21 = vld [vmem:[%s6592_s5 + $0x270] sm:$0xff]  ;;  %v3549_v22 = vld [vmem:[%s6592_s5 + $0x278] sm:$0xff] }
 0x50e   : > { %v3425_v15 = vadd.f32 %v3424_v34, %v3423_v24  ;;  %v3431_v19 = vadd.f32 %v3430_v30, %v3429_v25  ;;  %4528 = vmatprep.subr.bf16.mxu1 %v4527_v9  ;;  %v4537_v56 = vpack.c.bf16 %v3541_v46, %v3540_v45  ;;  %v4539_v62 = vpack.c.bf16 %v3559_v52, %v3558_v51  ;;  %v4281_v53 = vld [vmem:[#allocation11] ss:$0 sm:$0xff] }
 0x50f   : > { %v3461_v39 = vadd.f32 %v3460_v35, %v3459_v42  ;;  %v3467_v54 = vadd.f32 %v3466_v36, %v3465_v27  ;;  %v4541_v4 = vpack.c.bf16 %v3543_v0, %v3542_v63  ;;  %v4543_v5 = vpack.c.bf16 %v3561_v3, %v3560_v1 }
 0x510   : > { %v3426_v59 = vrot.slane %v3425_v15, 1  ;;  %v3432_v60 = vrot.slane %v3431_v19, 1  ;;  %v4545_v12 = vpack.c.bf16 %v3545_v7, %v3544_v6  ;;  %v4547_v26 = vpack.c.bf16 %v3563_v11, %v3562_v10 }
 0x511   : > { %v3462_v8 = vrot.slane %v3461_v39, 1  ;;  %v3468_v9 = vrot.slane %v3467_v54, 1  ;;  %4530 = vmatpush3.bf16.msra.mxu1 %v4529_v14  ;;  %v4549_v28 = vpack.c.bf16 %v3547_v23, %v3546_v13  ;;  %v4551_v20 = vpack.c.bf16 %v3565_v16, %v3564_v18 }
 0x512   : > { %4532 = vmatprep.subr.bf16.mxu1 %v4531_v44  ;;  %v3427_v47 = vadd.f32 %v3426_v59, %v3425_v15  ;;  %v3433_v49 = vadd.f32 %v3432_v60, %v3431_v19  ;;  %v4553_v24 = vpack.c.bf16 %v3549_v22, %v3548_v21 }
 0x513   : > { %v3463_v48 = vadd.f32 %v3462_v8, %v3461_v39  ;;  %v3469_v50 = vadd.f32 %v3468_v9, %v3467_v54 }
 0x515   : > { %v3591_v55 = vsel %vm3585_vm2, %v3469_v50, %v3433_v49  ;;  %4534 = vmatpush3.bf16.msra.mxu1 %v4533_v41  ;;  %v3590_v61 = vsel %vm3585_vm2, %v3463_v48, %v3427_v47 }
 0x516   : > { %3802 = vmatprep.mubr.f32.mxu1 %v3591_v55  ;;  %4536 = vmatprep.subr.bf16.mxu1 %v4535_v43 }
 0x519   : > { %4538 = vmatpush3.bf16.msra.mxu1 %v4537_v56 }
 0x51a   : > { %4540 = vmatprep.subr.bf16.mxu1 %v4539_v62 }
 0x51d   : > { %4542 = vmatpush3.bf16.msra.mxu1 %v4541_v4 }
 0x51e   : > { %4544 = vmatprep.subr.bf16.mxu1 %v4543_v5 }
 0x521   : > { %4546 = vmatpush3.bf16.msra.mxu1 %v4545_v12 }
 0x522   : > { %4548 = vmatprep.subr.bf16.mxu1 %v4547_v26 }
 0x525   : > { %4550 = vmatpush3.bf16.msra.mxu1 %v4549_v28 }
 0x526   : > { %4552 = vmatprep.subr.bf16.mxu1 %v4551_v20 }
 0x529   : > { %4554 = vmatpush3.bf16.msra.mxu1 %v4553_v24 }
 0x52c   : > { %3803 = vmatmul.mubr.f32.vlgmr.msra.gmra.mrb[14].mxu1 %v3590_v61 }
 0x5df   : > { %v4386_v25 = vpop.f32.mrb[12].mxu1 }
 0x5e0   : > { %v4421_v37 = vpop.f32.mrb[12].mxu0  ;;  %v4387_v38 = vpop.f32.mrb[13].mxu1 }
 0x5e1   : > { %v4388_v40 = vadd.f32 %v4387_v38, %v4386_v25  ;;  %v4422_v42 = vpop.f32.mrb[13].mxu0 }
 0x5e2   : > { %v4423_v27 = vadd.f32 %v4422_v42, %v4421_v37 }
 0x5e3   : > { %v3665_v29 = vadd.f32 %v4388_v40, %v4281_v53 }
 0x5e5   : > { %v3735_v31 = vadd.f32 %v4423_v27, %v3665_v29 }
 0x5ff   : > { %v4456_v33 = vpop.f32.mrb[14].mxu1 }
 0x600   : > { %v4457_v17 = vpop.f32.mrb[15].mxu1 }
 0x601   : > { %v4458_v34 = vadd.f32 %v4457_v17, %v4456_v33 }
 0x603   : > { %v3805_v30 = vadd.f32 %v4458_v34, %v3735_v31 }
 0x605   : > { %3809 = vst.msk [vmem:[#allocation12] sm:$0x3] %vm3808_vm3, %v3805_v30 }
 0x606 PF: > { %p4639_p2 = scmp.eq.s32.totalorder %s5469_s28, 2  ;;  %s5409_s22 = smov [#allocation12]  }
 0x607   : > { %s3817_s23 = sshll.u32 %s5409_s22, 4  ;;  %s3818_s23 = int_to_ptr.vmem [resolvable:$true] %s3817_s23 }
 0x608   : > { %s5324_s7 = scalar_lea.vmem %s3818_s23, 32  ;;  %p5331_p11 = scmp.lt.s32.totalorder %s3818_s23, %s3818_s23 }
 0x609   : > { %p5325_p9 = scmp.ne.s32.totalorder %s3818_s23, %s5324_s7  ;;  %p5332_p7 = scmp.lt.s32.totalorder %s5324_s7, %s5324_s7 }
 0x60b   : > { %p5326_p6 = pnand %p5325_p9, %p4639_p2  ;;  %p5333_p13 = por %p5332_p7, %p5331_p11 }
 0x60d   : > { %p5327_p0 = pneg %p5326_p6 }
 0x60f   : > { %p5334_p5 = pnand %p5333_p13, %p5327_p0 }
 0x611   : > { %5337 = shalt.err (!%p5334_p5)
}
 0x612   : > { %s6632_s27 = sld [smem:[#allocation21_spill]] }
 0x618   : > { %s6633_s1 = smov %s6632_s27  ;;  %s5338_s8 = scalar_lea.hbm %s6632_s27, 32 }
 0x619   : > { %p5339_p10 = scmp.ne.s32.totalorder %s6633_s1, %s5338_s8  ;;  %p5344_p3 = scmp.lt.u32.totalorder %s5338_s8, %s6633_s1 }
 0x61b   : > { %p5340_p8 = pnand %p5339_p10, %p4639_p2 }
 0x61d   : > { %p5341_p1 = pneg %p5340_p8 }
 0x61f   : > { %p5346_p4 = pnand %p5344_p3, %p5341_p1 }
 0x621   : > { %5349 = shalt.err (!%p5346_p4)
}
 0x622   : > { %4612 = dma.vmem_to_hbm [thread:$0]  (%p4639_p2), %s3818_s23, 32, %s6633_s1, [#allocation5]  }
 0x623   : > { %5379 = dma.done.wait (%p4639_p2), [#allocation5], 32  }
 0x624   : > { %5381 = vsyncadd (%p4639_p2), [#allocation5], 4294967264 }
 0x625 PF: > { %s6634_s27 = sld [smem:[#allocation17_spill]]  ;;  %s6635_s13 = sld [smem:[#allocation18_spill]] }
 0x626   : > { %s6636_s24 = smov %s5388_s25  ;;  %s6637_s25 = smov %s5392_s26 }
 0x62b   : > { %p20_p12 = scmp.ge.s32.totalorder %s6634_s27, 5   ;;  %s6638_s26 = smov %s6635_s13 }
 0x62d   :  { %22 = sbr.rel (!%p20_p12) target bundleno = 10 (0xa), region = 123 }
 0x634   :  { %3830 = vsyncpa [#allocation4], 1 }
 0x635   :  { %3832 = vsyncpa [#allocation4 + $0x1], 1 }
 0x636   :  { %3833 = vsyncpa [#allocation7], 1 }
 0x637   :  { %3835 = vsyncpa [#allocation7 + $0x1], 1 }
 0x638   :  { %3836 = vsyncpa [#allocation10], 1 }
 0x639   :  { %3837 = vsyncpa [#allocation5], 1 }
 0x63a   :  { %3839 = vsyncpa [#allocation5 + $0x1], 1 }

</bundles_post_ra>
